<compile_context>
chip_gen: v7x
topology: tpu7x:2x2x1
jax: 0.10.0
libtpu: 0.0.40
codegen_flags: <defaults>
</compile_context>

<pallas_src>
import functools
import math

import jax
import jax.numpy as jnp
from jax.experimental import pallas as pl
from jax.experimental.pallas import tpu as pltpu


def _round_up(x: int, m: int) -> int:
    return -(-x // m) * m


# ~3 MiB tiles: measured sweet spot (~85% of HBM roofline) while keeping the
# scale kernel's 2*(in) + 2*(out) double-buffered tiles ~12 MiB < v5e's 16 MiB
# default scoped VMEM.
_TILE_BUDGET_BYTES = 3 << 20


def _pick_row_tile(n_rows: int, width: int,
                   budget_bytes: int = _TILE_BUDGET_BYTES) -> int:
    """Rows per grid step, sized purely by bytes (no hard row cap).

    VMEM footprint of an f32 row is round_up(width, 128)*4 bytes (narrow
    widths pad to a full 128-lane tile), so the budget uses the padded width.
    """
    bytes_per_row = _round_up(width, 128) * 4
    rows = max(8, (budget_bytes // bytes_per_row) // 8 * 8)
    if rows >= n_rows:
        return n_rows   # single block == full dim (satisfies (8,128) rule, no tail)
    return rows         # multiple of 8; row tail is masked in-kernel


def _pick_fold(n_rows: int, d: int, max_w: int = 2048) -> int:
    """Fold factor r: reshape (n, d) -> (n/r, r*d) so r*d % 128 == 0.

    Only folds when r divides n (the reshape is then a free, row-major view --
    no padding / extra HBM pass).  Returns 1 when d is already lane-aligned or
    no valid fold exists.
    """
    if d % 128 == 0:
        return 1
    base = (d * 128 // math.gcd(d, 128)) // d   # lcm(d, 128) / d
    if base * d > max_w:
        return 1
    best, r = 1, base
    while r * d <= max_w:
        if n_rows % r == 0:
            best = r
        r += base
    return best


# --------------------------- covariance kernel ------------------------------
def _cov_kernel(x_ref, shift_ref, gram_ref, sumx_ref, *,
                n_rows, tn, blocks_per_slice, mask_tail):
    p = pl.program_id(0)
    k = pl.program_id(1)

    @pl.when(k == 0)
    def _():
        gram_ref[...] = jnp.zeros_like(gram_ref)
        sumx_ref[...] = jnp.zeros_like(sumx_ref)

    # Pivot-row shift: identical covariance, far better f32 conditioning than
    # the raw E[xx^T] - mean mean^T form.
    x = x_ref[...].astype(jnp.float32) - shift_ref[...]
    if mask_tail:
        # Zero rows past the true row count instead of padding flat in HBM.
        row0 = (p * blocks_per_slice + k) * tn
        local = jax.lax.broadcasted_iota(jnp.int32, x.shape, 0)
        x = jnp.where(local < (n_rows - row0), x, jnp.float32(0.0))

    sumx_ref[...] += jnp.sum(x, axis=0, keepdims=True)
    # x^T @ x on the MXU without materializing an XLU transpose: contract the
    # row dimension of both operands.
    gram_ref[...] += jax.lax.dot_general(
        x, x,
        dimension_numbers=(((0,), (0,)), ((), ())),
        preferred_element_type=jnp.float32)


def _covariance(flat):
    """cov = (flat - mean)^T (flat - mean) / n + 0.01*I  (matches torch ref)."""
    n, d = flat.shape
    tn = _pick_row_tile(n, d)
    total_blocks = pl.cdiv(n, tn)
    # Megacore split of the reduction on v7x (2 TCs); P=1 when there is only
    # one row block (also the no-op case on v5e/v6e).
    P = 2 if total_blocks >= 2 else 1
    K = pl.cdiv(total_blocks, P)
    mask_tail = (P * K * tn) > n

    shift = flat[:1].astype(jnp.float32)   # (1, d) pivot row

    def x_map(p, k):
        # Clamp so a trailing (p, k) past the last block never DMAs fully out
        # of range; its rows are zeroed by the in-kernel mask anyway.
        return (jnp.minimum(p * K + k, total_blocks - 1), 0)

    # TODO(synk): for very large d (time-dependent with big T*D) the (d, d)
    # Gram output block should itself be tiled over a column grid axis to stay
    # within v7x's 64 MiB VMEM; not needed at these feature sizes.
    partial_gram, partial_sum = pl.pallas_call(
        functools.partial(_cov_kernel, n_rows=n, tn=tn,
                          blocks_per_slice=K, mask_tail=mask_tail),
        out_shape=(jax.ShapeDtypeStruct((P, d, d), jnp.float32),
                   jax.ShapeDtypeStruct((P, 1, d), jnp.float32)),
        grid_spec=pltpu.PrefetchScalarGridSpec(
            num_scalar_prefetch=0,
            grid=(P, K),
            in_specs=[
                pl.BlockSpec((tn, d), x_map),
                pl.BlockSpec((1, d), lambda p, k: (0, 0)),   # grid-invariant
            ],
            out_specs=(
                # Output blocks indexed only by the parallel axis -> resident
                # accumulators across the reduction axis (no scratch copy).
                pl.BlockSpec((None, d, d), lambda p, k: (p, 0, 0)),
                pl.BlockSpec((None, 1, d), lambda p, k: (p, 0, 0)),
            ),
        ),
        compiler_params=pltpu.CompilerParams(
            dimension_semantics=("parallel", "arbitrary")),
    )(flat, shift)

    # Tiny (d, d) finalize in JAX glue: combine partials, de-shift, symmetrize.
    gram = jnp.sum(partial_gram, axis=0)          # (d, d)
    sumx = jnp.sum(partial_sum, axis=0)           # (1, d)
    inv_n = jnp.float32(1.0 / n)
    mean_s = sumx * inv_n
    cov = gram * inv_n - mean_s.T @ mean_s
    cov = 0.5 * (cov + cov.T) + 0.01 * jnp.eye(d, dtype=jnp.float32)
    return cov


# ------------------------------ scale kernel --------------------------------
def _scale_kernel(x_ref, s_ref, o_ref):
    # '+1' on the (1, w) sample row; multiply broadcasts it across the tile.
    o_ref[...] = (x_ref[...] * (s_ref[...] + jnp.float32(1.0))).astype(o_ref.dtype)


def _apply_noise(flat, sample):
    """out = flat * (sample + 1), row-tiled, lane-dense folded when possible."""
    n, d = flat.shape

    r = _pick_fold(n, d)
    if r > 1:
        flat2 = flat.reshape(n // r, r * d)        # free row-major view, no pad
        sample2 = jnp.tile(sample, (1, r))
    else:
        flat2, sample2 = flat, sample

    m, w = flat2.shape
    tm = _pick_row_tile(m, w)
    grid = (pl.cdiv(m, tm),)                        # no padding; boundary block
                                                    # writes past m are dropped
    out = pl.pallas_call(
        _scale_kernel,
        out_shape=jax.ShapeDtypeStruct((m, w), flat2.dtype),
        grid_spec=pltpu.PrefetchScalarGridSpec(
            num_scalar_prefetch=0,
            grid=grid,
            in_specs=[
                pl.BlockSpec((tm, w), lambda i: (i, 0)),
                pl.BlockSpec((1, w), lambda i: (0, 0)),   # grid-invariant sample
            ],
            out_specs=pl.BlockSpec((tm, w), lambda i: (i, 0)),
        ),
        compiler_params=pltpu.CompilerParams(
            dimension_semantics=("parallel",)),     # shard rows across v7x TCs
    )(flat2, sample2)

    return out.reshape(n, d)


# ------------------------------ ASNI forward --------------------------------
def asni_forward(x, key, time_independent: bool):
    B, T, D = x.shape
    if time_independent:
        flat = x.reshape(B * T, D)
    else:
        flat = x.reshape(B, T * D)
    n, d = flat.shape

    # Pallas: streaming Gram reduction -> covariance (+ 0.01*I).
    cov = _covariance(flat)

    # MVN(0, cov) sample: cov -> L -> L @ z.
    # TODO(synk): Cholesky factorization has no clean Pallas TPU primitive;
    # done in plain JAX glue (matches torch MultivariateNormal(zeros, cov).sample()).
    L = jnp.linalg.cholesky(cov)
    z = jax.random.normal(key, (d,), dtype=jnp.float32)
    sample = (L @ z).reshape(1, d).astype(flat.dtype)

    # Pallas: elementwise flat * (sqrt(1)*sample + 1).
    out_flat = _apply_noise(flat, sample)
    return out_flat.reshape(B, T, D)


if __name__ == "__main__":
    key = jax.random.PRNGKey(0)
    kx, kz_ti, kz_td = jax.random.split(key, 3)

    B, T, D = 2, 8, 32
    x = jax.random.normal(kx, (B, T, D), dtype=jnp.float32)

    fwd = jax.jit(asni_forward, static_argnames=("time_independent",))

    # time-independent branch: cov over D features across B*T rows
    out_ti = fwd(x, kz_ti, time_independent=True)
    # time-dependent branch: cov over T*D features across B rows
    out_td = fwd(x, kz_td, time_independent=False)

    jax.block_until_ready(out_ti)
    jax.block_until_ready(out_td)

    assert out_ti.shape == (B, T, D)
    assert out_td.shape == (B, T, D)
    assert bool(jnp.all(jnp.isfinite(out_ti)))
    assert bool(jnp.all(jnp.isfinite(out_td)))

    print("KERNEL_OK")
</pallas_src>

<mosaic_0001>
module attributes {stable_mosaic.version = 11 : i64} {
  func.func @_cov_kernel(%arg0: i32, %arg1: i32, %arg2: memref<16x32xf32, #tpu.memory_space<vmem>>, %arg3: memref<1x32xf32, #tpu.memory_space<vmem>>, %arg4: memref<1x32x32xf32, #tpu.memory_space<vmem>>, %arg5: memref<1x1x32xf32, #tpu.memory_space<vmem>>) attributes {dimension_semantics = [#tpu.dimension_semantics<parallel>, #tpu.dimension_semantics<arbitrary>], iteration_bounds = array<i64: 1, 1>, scalar_prefetch = 0 : i64, scratch_operands = 0 : i64, tpu.core_type = #tpu.core_type<tc>, window_params = [{transform_indices = @transform_0, window_bounds = array<i64: 16, 32>}, {pipeline_mode = #tpu.pipeline_mode<synchronous>, transform_indices = @transform_1, window_bounds = array<i64: 1, 32>}, {transform_indices = @transform_2, window_bounds = array<i64: 1, 32, 32>}, {transform_indices = @transform_3, window_bounds = array<i64: 1, 1, 32>}]} {
    %c0_i32 = arith.constant 0 : i32
    %0 = arith.cmpi eq, %arg1, %c0_i32 : i32
    %1 = arith.extui %0 : i1 to i32
    %c0_i32_0 = arith.constant 0 : i32
    %2 = arith.cmpi ne, %1, %c0_i32_0 : i32
    scf.if %2 {
      %cst_17 = arith.constant 0.000000e+00 : f32
      %22 = vector.broadcast %cst_17 : f32 to vector<32x32xf32>
      %c0_18 = arith.constant 0 : index
      %c0_19 = arith.constant 0 : index
      %c0_20 = arith.constant 0 : index
      %23 = vector.load %arg4[%c0_18, %c0_19, %c0_20] : memref<1x32x32xf32, #tpu.memory_space<vmem>>, vector<1x32x32xf32>
      %24 = vector.shape_cast %23 : vector<1x32x32xf32> to vector<32x32xf32>
      %25 = vector.shape_cast %22 : vector<32x32xf32> to vector<1x32x32xf32>
      tpu.vector_store %arg4[%c0_18, %c0_19, %c0_20], %25 {strides = array<i32>} : memref<1x32x32xf32, #tpu.memory_space<vmem>>, vector<1x32x32xf32>,
      %cst_21 = arith.constant 0.000000e+00 : f32
      %26 = vector.broadcast %cst_21 : f32 to vector<1x32xf32>
      %c0_22 = arith.constant 0 : index
      %c0_23 = arith.constant 0 : index
      %c0_24 = arith.constant 0 : index
      %27 = vector.load %arg5[%c0_22, %c0_23, %c0_24] : memref<1x1x32xf32, #tpu.memory_space<vmem>>, vector<1x1x32xf32>
      %28 = vector.shape_cast %27 : vector<1x1x32xf32> to vector<1x32xf32>
      %29 = vector.shape_cast %26 : vector<1x32xf32> to vector<1x1x32xf32>
      tpu.vector_store %arg5[%c0_22, %c0_23, %c0_24], %29 {strides = array<i32>} : memref<1x1x32xf32, #tpu.memory_space<vmem>>, vector<1x1x32xf32>,
    } else {
    }
    %c0 = arith.constant 0 : index
    %c0_1 = arith.constant 0 : index
    %3 = vector.load %arg2[%c0, %c0_1] : memref<16x32xf32, #tpu.memory_space<vmem>>, vector<16x32xf32>
    %c0_2 = arith.constant 0 : index
    %c0_3 = arith.constant 0 : index
    %4 = vector.load %arg3[%c0_2, %c0_3] : memref<1x32xf32, #tpu.memory_space<vmem>>, vector<1x32xf32>
    %5 = vector.broadcast %4 : vector<1x32xf32> to vector<16x32xf32>
    %6 = arith.subf %3, %5 : vector<16x32xf32>
    %c0_4 = arith.constant 0 : index
    %c0_5 = arith.constant 0 : index
    %c0_6 = arith.constant 0 : index
    %7 = vector.load %arg5[%c0_4, %c0_5, %c0_6] : memref<1x1x32xf32, #tpu.memory_space<vmem>>, vector<1x1x32xf32>
    %8 = vector.shape_cast %7 : vector<1x1x32xf32> to vector<1x32xf32>
    %cst = arith.constant dense<0.000000e+00> : vector<32xf32>
    %9 = vector.multi_reduction <add>, %6, %cst [0] : vector<16x32xf32> to vector<32xf32>
    %10 = vector.shape_cast %9 : vector<32xf32> to vector<1x32xf32>
    %11 = arith.addf %8, %10 : vector<1x32xf32>
    %c0_7 = arith.constant 0 : index
    %c0_8 = arith.constant 0 : index
    %c0_9 = arith.constant 0 : index
    %12 = vector.load %arg5[%c0_7, %c0_8, %c0_9] : memref<1x1x32xf32, #tpu.memory_space<vmem>>, vector<1x1x32xf32>
    %13 = vector.shape_cast %12 : vector<1x1x32xf32> to vector<1x32xf32>
    %14 = vector.shape_cast %11 : vector<1x32xf32> to vector<1x1x32xf32>
    tpu.vector_store %arg5[%c0_7, %c0_8, %c0_9], %14 {strides = array<i32>} : memref<1x1x32xf32, #tpu.memory_space<vmem>>, vector<1x1x32xf32>,
    %c0_10 = arith.constant 0 : index
    %c0_11 = arith.constant 0 : index
    %c0_12 = arith.constant 0 : index
    %15 = vector.load %arg4[%c0_10, %c0_11, %c0_12] : memref<1x32x32xf32, #tpu.memory_space<vmem>>, vector<1x32x32xf32>
    %16 = vector.shape_cast %15 : vector<1x32x32xf32> to vector<32x32xf32>
    %cst_13 = arith.constant dense<0.000000e+00> : vector<32x32xf32>
    %17 = tpu.matmul %6, %6, %cst_13 {dimension_numbers = #tpu.dot_dimension_numbers<[0], [0], [1], [1], [0, 1, 1, 1], [], []>} : vector<16x32xf32>, vector<16x32xf32>, vector<32x32xf32> -> vector<32x32xf32>
    %18 = arith.addf %16, %17 : vector<32x32xf32>
    %c0_14 = arith.constant 0 : index
    %c0_15 = arith.constant 0 : index
    %c0_16 = arith.constant 0 : index
    %19 = vector.load %arg4[%c0_14, %c0_15, %c0_16] : memref<1x32x32xf32, #tpu.memory_space<vmem>>, vector<1x32x32xf32>
    %20 = vector.shape_cast %19 : vector<1x32x32xf32> to vector<32x32xf32>
    %21 = vector.shape_cast %18 : vector<32x32xf32> to vector<1x32x32xf32>
    tpu.vector_store %arg4[%c0_14, %c0_15, %c0_16], %21 {strides = array<i32>} : memref<1x32x32xf32, #tpu.memory_space<vmem>>, vector<1x32x32xf32>,
    return
  }
  func.func @transform_0(%arg0: i32, %arg1: i32) -> (i32, i32) {
    %c1_i32 = arith.constant 1 : i32
    %0 = arith.muli %arg0, %c1_i32 : i32
    %1 = arith.addi %0, %arg1 : i32
    %c0_i32 = arith.constant 0 : i32
    %2 = arith.minsi %1, %c0_i32 : i32
    %c0_i32_0 = arith.constant 0 : i32
    %c0_i32_1 = arith.constant 0 : i32
    return %2, %c0_i32_0 : i32, i32
  }
  func.func @transform_1(%arg0: i32, %arg1: i32) -> (i32, i32) {
    %c0_i32 = arith.constant 0 : i32
    %c0_i32_0 = arith.constant 0 : i32
    %c0_i32_1 = arith.constant 0 : i32
    return %c0_i32, %c0_i32_0 : i32, i32
  }
  func.func @transform_2(%arg0: i32, %arg1: i32) -> (i32, i32, i32) {
    %c0_i32 = arith.constant 0 : i32
    %c0_i32_0 = arith.constant 0 : i32
    %c0_i32_1 = arith.constant 0 : i32
    return %arg0, %c0_i32, %c0_i32_0 : i32, i32, i32
  }
  func.func @transform_3(%arg0: i32, %arg1: i32) -> (i32, i32, i32) {
    %c0_i32 = arith.constant 0 : i32
    %c0_i32_0 = arith.constant 0 : i32
    %c0_i32_1 = arith.constant 0 : i32
    return %arg0, %c0_i32, %c0_i32_0 : i32, i32, i32
  }
}

module attributes {stable_mosaic.version = 11 : i64} {
  func.func @_scale_kernel(%arg0: i32, %arg1: memref<1x512xf32, #tpu.memory_space<vmem>>, %arg2: memref<1x512xf32, #tpu.memory_space<vmem>>, %arg3: memref<1x512xf32, #tpu.memory_space<vmem>>) attributes {dimension_semantics = [#tpu.dimension_semantics<parallel>], iteration_bounds = array<i64: 1>, scalar_prefetch = 0 : i64, scratch_operands = 0 : i64, tpu.core_type = #tpu.core_type<tc>, window_params = [{transform_indices = @transform_0, window_bounds = array<i64: 1, 512>}, {pipeline_mode = #tpu.pipeline_mode<synchronous>, transform_indices = @transform_1, window_bounds = array<i64: 1, 512>}, {transform_indices = @transform_2, window_bounds = array<i64: 1, 512>}]} {
    %c0 = arith.constant 0 : index
    %c0_0 = arith.constant 0 : index
    %0 = vector.load %arg1[%c0, %c0_0] : memref<1x512xf32, #tpu.memory_space<vmem>>, vector<1x512xf32>
    %c0_1 = arith.constant 0 : index
    %c0_2 = arith.constant 0 : index
    %1 = vector.load %arg2[%c0_1, %c0_2] : memref<1x512xf32, #tpu.memory_space<vmem>>, vector<1x512xf32>
    %cst = arith.constant 1.000000e+00 : f32
    %2 = vector.broadcast %cst : f32 to vector<1x512xf32>
    %3 = arith.addf %1, %2 : vector<1x512xf32>
    %4 = arith.mulf %0, %3 : vector<1x512xf32>
    %c0_3 = arith.constant 0 : index
    %c0_4 = arith.constant 0 : index
    %5 = vector.load %arg3[%c0_3, %c0_4] : memref<1x512xf32, #tpu.memory_space<vmem>>, vector<1x512xf32>
    tpu.vector_store %arg3[%c0_3, %c0_4], %4 {strides = array<i32>} : memref<1x512xf32, #tpu.memory_space<vmem>>, vector<1x512xf32>,
    return
  }
  func.func @transform_0(%arg0: i32) -> (i32, i32) {
    %c0_i32 = arith.constant 0 : i32
    %c0_i32_0 = arith.constant 0 : i32
    return %arg0, %c0_i32 : i32, i32
  }
  func.func @transform_1(%arg0: i32) -> (i32, i32) {
    %c0_i32 = arith.constant 0 : i32
    %c0_i32_0 = arith.constant 0 : i32
    %c0_i32_1 = arith.constant 0 : i32
    return %c0_i32, %c0_i32_0 : i32, i32
  }
  func.func @transform_2(%arg0: i32) -> (i32, i32) {
    %c0_i32 = arith.constant 0 : i32
    %c0_i32_0 = arith.constant 0 : i32
    return %arg0, %c0_i32 : i32, i32
  }
}

</mosaic_0001>

<bundles_post_ra>
// kernel: custom-call.2
= control target key start
LH: loop header
LB: loop body
LE: loop exit
PB: predicated region body
PF: predicated region fallthrough
CT: control target
= control target key end

     0   :  { %v1561_v0 = vmov 0.0   ;;  %vm53_vm0 = vcmask 7168   ;;  %vm110_vm1 = vcmask 15368   ;;  %vm127_vm2 = vcmask 1047553   ;;  %s1900_s0 = inlined_call_operand.vmem [shape: f32[32,32], index: 0, kind: input, shape index: {}]   ;;  %s1901_s1 = inlined_call_operand.vmem [shape: f32[32,32], index: 1, kind: output, shape index: {}]  }
   0x1   :  { %46 = vst [vmem:[#allocation1] sm:$0xff] %v1561_v0  ;;  %v1575_v4 = vld [vmem:[%s1900_s0] sm:$0xff]  ;;  %v1581_v5 = vld [vmem:[%s1900_s0 + $0x8] sm:$0xff]  ;;  %v1601_v22 = vld [vmem:[%s1900_s0 + $0x10] sm:$0xff]  ;;  %vm171_vm4 = vcmask 23568   ;;  %vm188_vm5 = vcmask 1047554  }
   0x2   :  { %36 = vst [vmem:[#allocation0] sm:$0xff] %v1575_v4  ;;  %38 = vst [vmem:[#allocation0 + $0x8] sm:$0xff] %v1581_v5  ;;  %v1626_v46 = vld [vmem:[%s1900_s0 + $0x18] sm:$0xff]  ;;  %vm232_vm7 = vcmask 31768   ;;  %vm249_vm8 = vcmask 1047555   ;;  %vm293_vm10 = vcmask 39968  }
   0x3   :  { %40 = vst [vmem:[#allocation0 + $0x10] sm:$0xff] %v1601_v22  ;;  %vm128_vm3 = vmand %vm110_vm1, %vm127_vm2  ;;  %vm310_vm11 = vcmask 1047556   ;;  %vm354_vm13 = vcmask 48168   ;;  %vm371_vm14 = vcmask 1047557  }
   0x4   :  { %42 = vst [vmem:[#allocation0 + $0x18] sm:$0xff] %v1626_v46  ;;  %vm189_vm6 = vmand %vm171_vm4, %vm188_vm5 }
   0x5   :  { %vm250_vm9 = vmand %vm232_vm7, %vm249_vm8 }
   0x6   :  { %vm311_vm12 = vmand %vm293_vm10, %vm310_vm11 }
   0x7   :  { %vm372_vm15 = vmand %vm354_vm13, %vm371_vm14 }
   0x8   :  { %v54_v1 = vld [vmem:[#allocation1] ss:$0 sm:$0xff] }
   0x9   :  { %v56_v2 = vmul.f32 %v54_v1, %v54_v1  ;;  %v75_v3 = vmul.f32 0.0, %v54_v1  ;;  %v55_v6 = vld [vmem:[#allocation0] ss:$0 sm:$0xff]  ;;  %v114_v23 = vld [vmem:[#allocation0 + $0x1] ss:$0 sm:$0xff] }
   0xa   :  { %v175_v47 = vld [vmem:[#allocation0 + $0x2] ss:$0 sm:$0xff] }
   0xb   :  { %57 = vadd.xlane.f32.xlu0 %v56_v2  ;;  %76 = vadd.xlane.f32.xlu1 %v75_v3 }
   0xf   :  { %64 = vadd.xlane.f32.xlu0 %v75_v3 }
  0x98   :  { %v58_v7 = vpop.xlane.xlu0 %57  ;;  %v77_v13 = vpop.xlane.xlu1 %76 }
  0x99   :  { %v59_v8 = vsub.f32 %v55_v6, %v58_v7  ;;  %v78_v15 = vsub.f32 %v1581_v5, %v77_v13 }
  0x9b   :  { %1496 = vrsqrt.f32 %v59_v8 }
  0x9c   :  { %v65_v9 = vpop.xlane.xlu0 %64 }
  0x9d   :  { %v66_v10 = vsub.f32 %v1575_v4, %v65_v9 }
  0xa5   :  { %v1585_v11 = vpop.eup %1496 }
  0xa6   :  { %v67_v12 = vmul.f32 %v1585_v11, %v66_v10  ;;  %v79_v16 = vmul.f32 %v1585_v11, %v78_v15 }
  0xa8   :  { %v68_v14 = vsel %vm53_vm0, %v67_v12, 0.0  ;;  %v80_v17 = vsel %vm53_vm0, %v79_v16, 0.0 }
  0xa9   :  { %70 = vst [vmem:[#allocation1] sm:$0xff] %v68_v14 }
  0xb0   :  { %v1592_v18 = vld [vmem:[#allocation1 + $0x1] ss:$0 sm:$0xff] }
  0xb1   :  { %v122_v19 = vmul.f32 %v1592_v18, %v68_v14  ;;  %v115_v20 = vmul.f32 %v1592_v18, %v1592_v18  ;;  %v136_v21 = vmul.f32 %v1592_v18, %v80_v17 }
  0xb3   :  { %123 = vadd.xlane.f32.xlu0 %v122_v19  ;;  %116 = vadd.xlane.f32.xlu1 %v115_v20 }
  0xb7   :  { %137 = vadd.xlane.f32.xlu0 %v136_v21  ;;  %89 = vadd.xlane.f32.xlu1 %v75_v3 }
 0x140   :  { %v117_v24 = vpop.xlane.xlu1 %116  ;;  %v124_v26 = vpop.xlane.xlu0 %123 }
 0x141   :  { %v118_v25 = vsub.f32 %v114_v23, %v117_v24  ;;  %v125_v27 = vsub.f32 %v1575_v4, %v124_v26 }
 0x143   :  { %1498 = vrsqrt.f32 %v118_v25 }
 0x144   :  { %v90_v29 = vpop.xlane.xlu1 %89  ;;  %v138_v35 = vpop.xlane.xlu0 %137 }
 0x145   :  { %v91_v32 = vsub.f32 %v1601_v22, %v90_v29  ;;  %v139_v36 = vsub.f32 %v1581_v5, %v138_v35 }
 0x147   :  { %v92_v34 = vmul.f32 %v1585_v11, %v91_v32 }
 0x149   :  { %v93_v37 = vsel %vm53_vm0, %v92_v34, 0.0 }
 0x14a   :  { %v149_v43 = vmul.f32 %v1592_v18, %v93_v37 }
 0x14d   :  { %v1605_v28 = vpop.eup %1498 }
 0x14e   :  { %v126_v30 = vmul.f32 %v1605_v28, %v125_v27  ;;  %v140_v38 = vmul.f32 %v1605_v28, %v139_v36 }
 0x150   :  { %v129_v31 = vsel %vm128_vm3, %v126_v30, 0.0  ;;  %v141_v42 = vsel %vm110_vm1, %v140_v38, 0.0 }
 0x151   :  { %v130_v33 = vadd.f32 %v129_v31, %v68_v14  ;;  %v142_v44 = vadd.f32 %v141_v42, %v80_v17  ;;  %v236_v14 = vld [vmem:[#allocation0 + $0x3] ss:$0 sm:$0xff] }
 0x153   :  { %131 = vst [vmem:[#allocation1] sm:$0xff] %v130_v33 }
 0x15a   :  { %v1615_v39 = vld [vmem:[#allocation1 + $0x2] ss:$0 sm:$0xff] }
 0x15b   :  { %v183_v40 = vmul.f32 %v1615_v39, %v130_v33  ;;  %v176_v41 = vmul.f32 %v1615_v39, %v1615_v39  ;;  %v197_v45 = vmul.f32 %v1615_v39, %v142_v44 }
 0x15d   :  { %184 = vadd.xlane.f32.xlu0 %v183_v40  ;;  %177 = vadd.xlane.f32.xlu1 %v176_v41 }
 0x161   :  { %102 = vadd.xlane.f32.xlu1 %v75_v3  ;;  %150 = vadd.xlane.f32.xlu0 %v149_v43 }
 0x165   :  { %198 = vadd.xlane.f32.xlu1 %v197_v45 }
 0x1ea   :  { %v178_v48 = vpop.xlane.xlu1 %177  ;;  %v185_v50 = vpop.xlane.xlu0 %184 }
 0x1eb   :  { %v179_v49 = vsub.f32 %v175_v47, %v178_v48  ;;  %v186_v51 = vsub.f32 %v1575_v4, %v185_v50  ;;  %v297_v47 = vld [vmem:[#allocation0 + $0x4] ss:$0 sm:$0xff] }
 0x1ed   :  { %1500 = vrsqrt.f32 %v179_v49 }
 0x1ee   :  { %v151_v53 = vpop.xlane.xlu0 %150  ;;  %v103_v54 = vpop.xlane.xlu1 %102 }
 0x1ef   :  { %v152_v56 = vsub.f32 %v1601_v22, %v151_v53  ;;  %v104_v57 = vsub.f32 %v1626_v46, %v103_v54 }
 0x1f1   :  { %v153_v60 = vmul.f32 %v1605_v28, %v152_v56  ;;  %v105_v61 = vmul.f32 %v1585_v11, %v104_v57 }
 0x1f2   :  { %v199_v62 = vpop.xlane.xlu1 %198 }
 0x1f3   :  { %v154_v63 = vsel %vm110_vm1, %v153_v60, 0.0  ;;  %v106_v0 = vsel %vm53_vm0, %v105_v61, 0.0  ;;  %v200_v1 = vsub.f32 %v1581_v5, %v199_v62  ;;  %vm415_vm0 = vcmask 56368  }
 0x1f4   :  { %v155_v6 = vadd.f32 %v154_v63, %v93_v37  ;;  %v162_v11 = vmul.f32 %v1592_v18, %v106_v0 }
 0x1f6   :  { %v210_v10 = vmul.f32 %v1615_v39, %v155_v6 }
 0x1f7   :  { %v1630_v52 = vpop.eup %1500 }
 0x1f8   :  { %v187_v55 = vmul.f32 %v1630_v52, %v186_v51  ;;  %v201_v2 = vmul.f32 %v1630_v52, %v200_v1 }
 0x1fa   :  { %v190_v58 = vsel %vm189_vm6, %v187_v55, 0.0  ;;  %v202_v9 = vsel %vm171_vm4, %v201_v2, 0.0  ;;  %vm537_vm6 = vcmask 72768  }
 0x1fb   :  { %v191_v59 = vadd.f32 %v190_v58, %v130_v33  ;;  %v203_v12 = vadd.f32 %v202_v9, %v142_v44 }
 0x1fd   :  { %192 = vst [vmem:[#allocation1] sm:$0xff] %v191_v59 }
 0x204   :  { %v1643_v3 = vld [vmem:[#allocation1 + $0x3] ss:$0 sm:$0xff] }
 0x205   :  { %v244_v7 = vmul.f32 %v1643_v3, %v191_v59  ;;  %v237_v8 = vmul.f32 %v1643_v3, %v1643_v3  ;;  %v258_v13 = vmul.f32 %v1643_v3, %v203_v12 }
 0x207   :  { %245 = vadd.xlane.f32.xlu1 %v244_v7  ;;  %238 = vadd.xlane.f32.xlu0 %v237_v8 }
 0x20b   :  { %211 = vadd.xlane.f32.xlu1 %v210_v10  ;;  %163 = vadd.xlane.f32.xlu0 %v162_v11 }
 0x20f   :  { %259 = vadd.xlane.f32.xlu0 %v258_v13 }
 0x294   :  { %v239_v15 = vpop.xlane.xlu0 %238  ;;  %v246_v17 = vpop.xlane.xlu1 %245 }
 0x295   :  { %v240_v16 = vsub.f32 %v236_v14, %v239_v15  ;;  %v247_v19 = vsub.f32 %v1575_v4, %v246_v17  ;;  %v358_v15 = vld [vmem:[#allocation0 + $0x5] ss:$0 sm:$0xff] }
 0x297   :  { %1502 = vrsqrt.f32 %v240_v16 }
 0x298   :  { %v164_v18 = vpop.xlane.xlu0 %163  ;;  %v212_v21 = vpop.xlane.xlu1 %211 }
 0x299   :  { %v165_v25 = vsub.f32 %v1626_v46, %v164_v18  ;;  %v213_v26 = vsub.f32 %v1601_v22, %v212_v21 }
 0x29b   :  { %v166_v29 = vmul.f32 %v1605_v28, %v165_v25  ;;  %v214_v30 = vmul.f32 %v1630_v52, %v213_v26 }
 0x29c   :  { %v260_v31 = vpop.xlane.xlu0 %259 }
 0x29d   :  { %v167_v32 = vsel %vm110_vm1, %v166_v29, 0.0  ;;  %v215_v33 = vsel %vm171_vm4, %v214_v30, 0.0  ;;  %v261_v34 = vsub.f32 %v1581_v5, %v260_v31  ;;  %vm432_vm1 = vcmask 1047558  }
 0x29e   :  { %v168_v37 = vadd.f32 %v167_v32, %v106_v0  ;;  %v216_v38 = vadd.f32 %v215_v33, %v155_v6  ;;  %vm433_vm3 = vmand %vm415_vm0, %vm432_vm1 }
 0x2a0   :  { %v223_v42 = vmul.f32 %v1615_v39, %v168_v37  ;;  %v271_v43 = vmul.f32 %v1643_v3, %v216_v38 }
 0x2a1   :  { %v1653_v20 = vpop.eup %1502 }
 0x2a2   :  { %v248_v23 = vmul.f32 %v1653_v20, %v247_v19  ;;  %v262_v35 = vmul.f32 %v1653_v20, %v261_v34 }
 0x2a4   :  { %v251_v24 = vsel %vm250_vm9, %v248_v23, 0.0  ;;  %v263_v41 = vsel %vm232_vm7, %v262_v35, 0.0 }
 0x2a5   :  { %v252_v27 = vadd.f32 %v251_v24, %v191_v59  ;;  %v264_v44 = vadd.f32 %v263_v41, %v203_v12 }
 0x2a7   :  { %253 = vst [vmem:[#allocation1] sm:$0xff] %v252_v27 }
 0x2ae   :  { %v1666_v36 = vld [vmem:[#allocation1 + $0x4] ss:$0 sm:$0xff] }
 0x2af   :  { %v305_v40 = vmul.f32 %v1666_v36, %v252_v27  ;;  %v298_v28 = vmul.f32 %v1666_v36, %v1666_v36  ;;  %v319_v45 = vmul.f32 %v1666_v36, %v264_v44 }
 0x2b1   :  { %306 = vadd.xlane.f32.xlu0 %v305_v40  ;;  %299 = vadd.xlane.f32.xlu1 %v298_v28 }
 0x2b5   :  { %224 = vadd.xlane.f32.xlu1 %v223_v42  ;;  %272 = vadd.xlane.f32.xlu0 %v271_v43 }
 0x2b9   :  { %320 = vadd.xlane.f32.xlu1 %v319_v45 }
 0x33e   :  { %v300_v48 = vpop.xlane.xlu1 %299  ;;  %v307_v50 = vpop.xlane.xlu0 %306 }
 0x33f   :  { %v301_v49 = vsub.f32 %v297_v47, %v300_v48  ;;  %v308_v51 = vsub.f32 %v1575_v4, %v307_v50  ;;  %v419_v48 = vld [vmem:[#allocation0 + $0x6] ss:$0 sm:$0xff] }
 0x341   :  { %1504 = vrsqrt.f32 %v301_v49 }
 0x342   :  { %v273_v39 = vpop.xlane.xlu0 %272  ;;  %v225_v54 = vpop.xlane.xlu1 %224 }
 0x343   :  { %v274_v56 = vsub.f32 %v1601_v22, %v273_v39  ;;  %v226_v57 = vsub.f32 %v1626_v46, %v225_v54 }
 0x345   :  { %v275_v60 = vmul.f32 %v1653_v20, %v274_v56  ;;  %v227_v61 = vmul.f32 %v1630_v52, %v226_v57 }
 0x346   :  { %v321_v62 = vpop.xlane.xlu1 %320 }
 0x347   :  { %v276_v63 = vsel %vm232_vm7, %v275_v60, 0.0  ;;  %v228_v0 = vsel %vm171_vm4, %v227_v61, 0.0  ;;  %v322_v1 = vsub.f32 %v1581_v5, %v321_v62  ;;  %vm476_vm4 = vcmask 64568  }
 0x348   :  { %v277_v7 = vadd.f32 %v276_v63, %v216_v38  ;;  %v229_v8 = vadd.f32 %v228_v0, %v168_v37 }
 0x34a   :  { %v332_v11 = vmul.f32 %v1666_v36, %v277_v7  ;;  %v284_v12 = vmul.f32 %v1643_v3, %v229_v8 }
 0x34b   :  { %v1676_v53 = vpop.eup %1504 }
 0x34c   :  { %v309_v55 = vmul.f32 %v1676_v53, %v308_v51  ;;  %v323_v2 = vmul.f32 %v1676_v53, %v322_v1 }
 0x34e   :  { %v312_v58 = vsel %vm311_vm12, %v309_v55, 0.0  ;;  %v324_v52 = vsel %vm293_vm10, %v323_v2, 0.0 }
 0x34f   :  { %v313_v59 = vadd.f32 %v312_v58, %v252_v27  ;;  %v325_v13 = vadd.f32 %v324_v52, %v264_v44 }
 0x351   :  { %314 = vst [vmem:[#allocation1] sm:$0xff] %v313_v59 }
 0x358   :  { %v1689_v6 = vld [vmem:[#allocation1 + $0x5] ss:$0 sm:$0xff] }
 0x359   :  { %v366_v9 = vmul.f32 %v1689_v6, %v313_v59  ;;  %v359_v10 = vmul.f32 %v1689_v6, %v1689_v6  ;;  %v380_v14 = vmul.f32 %v1689_v6, %v325_v13 }
 0x35b   :  { %367 = vadd.xlane.f32.xlu1 %v366_v9  ;;  %360 = vadd.xlane.f32.xlu0 %v359_v10 }
 0x35f   :  { %333 = vadd.xlane.f32.xlu1 %v332_v11  ;;  %285 = vadd.xlane.f32.xlu0 %v284_v12 }
 0x363   :  { %381 = vadd.xlane.f32.xlu0 %v380_v14 }
 0x3e8   :  { %v361_v16 = vpop.xlane.xlu0 %360  ;;  %v368_v19 = vpop.xlane.xlu1 %367 }
 0x3e9   :  { %v362_v17 = vsub.f32 %v358_v15, %v361_v16  ;;  %v369_v18 = vsub.f32 %v1575_v4, %v368_v19 }
 0x3eb   :  { %1506 = vrsqrt.f32 %v362_v17 }
 0x3ec   :  { %v286_v3 = vpop.xlane.xlu0 %285  ;;  %v334_v23 = vpop.xlane.xlu1 %333 }
 0x3ed   :  { %v287_v26 = vsub.f32 %v1626_v46, %v286_v3  ;;  %v335_v27 = vsub.f32 %v1601_v22, %v334_v23 }
 0x3ef   :  { %v288_v30 = vmul.f32 %v1653_v20, %v287_v26  ;;  %v336_v31 = vmul.f32 %v1676_v53, %v335_v27 }
 0x3f0   :  { %v382_v32 = vpop.xlane.xlu0 %381 }
 0x3f1   :  { %v289_v33 = vsel %vm232_vm7, %v288_v30, 0.0  ;;  %v337_v34 = vsel %vm293_vm10, %v336_v31, 0.0  ;;  %v383_v35 = vsub.f32 %v1581_v5, %v382_v32  ;;  %vm586_vm7 = vcmask 80968  }
 0x3f2   :  { %v290_v40 = vadd.f32 %v289_v33, %v229_v8  ;;  %v338_v28 = vadd.f32 %v337_v34, %v277_v7  ;;  %vm606_vm9 = vmand %vm586_vm7, %vm127_vm2 }
 0x3f4   :  { %v345_v43 = vmul.f32 %v1666_v36, %v290_v40  ;;  %v393_v44 = vmul.f32 %v1689_v6, %v338_v28 }
 0x3f5   :  { %v1699_v21 = vpop.eup %1506 }
 0x3f6   :  { %v370_v24 = vmul.f32 %v1699_v21, %v369_v18  ;;  %v384_v37 = vmul.f32 %v1699_v21, %v383_v35  ;;  %v480_v18 = vld [vmem:[#allocation0 + $0x7] ss:$0 sm:$0xff] }
 0x3f8   :  { %v373_v25 = vsel %vm372_vm15, %v370_v24, 0.0  ;;  %v385_v20 = vsel %vm354_vm13, %v384_v37, 0.0 }
 0x3f9   :  { %v374_v29 = vadd.f32 %v373_v25, %v313_v59  ;;  %v386_v45 = vadd.f32 %v385_v20, %v325_v13 }
 0x3fb   :  { %375 = vst [vmem:[#allocation1] sm:$0xff] %v374_v29 }
 0x402   :  { %v417_v38 = vld [vmem:[#allocation1 + $0x6] ss:$0 sm:$0xff] }
 0x403   :  { %v427_v41 = vmul.f32 %v417_v38, %v374_v29  ;;  %v420_v42 = vmul.f32 %v417_v38, %v417_v38  ;;  %v441_v47 = vmul.f32 %v417_v38, %v386_v45 }
 0x405   :  { %428 = vadd.xlane.f32.xlu0 %v427_v41  ;;  %421 = vadd.xlane.f32.xlu1 %v420_v42 }
 0x409   :  { %346 = vadd.xlane.f32.xlu1 %v345_v43  ;;  %394 = vadd.xlane.f32.xlu0 %v393_v44 }
 0x40d   :  { %442 = vadd.xlane.f32.xlu1 %v441_v47 }
 0x492   :  { %v422_v49 = vpop.xlane.xlu1 %421  ;;  %v429_v54 = vpop.xlane.xlu0 %428 }
 0x493   :  { %v423_v50 = vsub.f32 %v419_v48, %v422_v49  ;;  %v430_v57 = vsub.f32 %v1575_v4, %v429_v54 }
 0x495   :  { %1508 = vrsqrt.f32 %v423_v50 }
 0x496   :  { %v347_v51 = vpop.xlane.xlu1 %346  ;;  %v395_v60 = vpop.xlane.xlu0 %394 }
 0x497   :  { %v348_v39 = vsub.f32 %v1626_v46, %v347_v51  ;;  %v396_v63 = vsub.f32 %v1601_v22, %v395_v60 }
 0x499   :  { %v349_v55 = vmul.f32 %v1676_v53, %v348_v39  ;;  %v397_v4 = vmul.f32 %v1699_v21, %v396_v63  ;;  %v541_v39 = vld [vmem:[#allocation0 + $0x8] ss:$0 sm:$0xff] }
 0x49a   :  { %v443_v61 = vpop.xlane.xlu1 %442 }
 0x49b   :  { %v350_v56 = vsel %vm293_vm10, %v349_v55, 0.0  ;;  %v444_v0 = vsub.f32 %v1581_v5, %v443_v61  ;;  %v398_v7 = vsel %vm354_vm13, %v397_v4, 0.0  ;;  %vm637_vm10 = vcmask 89168  }
 0x49c   :  { %v351_v36 = vadd.f32 %v350_v56, %v290_v40  ;;  %v399_v10 = vadd.f32 %v398_v7, %v338_v28  ;;  %vm657_vm12 = vmand %vm637_vm10, %vm188_vm5 }
 0x49e   :  { %v406_v58 = vmul.f32 %v1689_v6, %v351_v36  ;;  %v454_v12 = vmul.f32 %v417_v38, %v399_v10 }
 0x49f   :  { %v1509_v59 = vpop.eup %1508 }
 0x4a0   :  { %v431_v62 = vmul.f32 %v1509_v59, %v430_v57  ;;  %407 = vadd.xlane.f32.xlu1 %v406_v58  ;;  %v445_v2 = vmul.f32 %v1509_v59, %v444_v0 }
 0x4a2   :  { %v434_v53 = vsel %vm433_vm3, %v431_v62, 0.0  ;;  %v446_v6 = vsel %vm415_vm0, %v445_v2, 0.0 }
 0x4a3   :  { %v435_v1 = vadd.f32 %v434_v53, %v374_v29  ;;  %v447_v8 = vadd.f32 %v446_v6, %v386_v45 }
 0x4a5   :  { %436 = vst [vmem:[#allocation1] sm:$0xff] %v435_v1 }
 0x4ac   :  { %v478_v9 = vld [vmem:[#allocation1 + $0x7] ss:$0 sm:$0xff] }
 0x4ad   :  { %v481_v52 = vmul.f32 %v478_v9, %v478_v9  ;;  %v502_v11 = vmul.f32 %v478_v9, %v447_v8 }
 0x4af   :  { %482 = vadd.xlane.f32.xlu0 %v481_v52  ;;  %503 = vadd.xlane.f32.xlu1 %v502_v11 }
 0x4b3   :  { %455 = vadd.xlane.f32.xlu0 %v454_v12  ;;  %v590_v12 = vld [vmem:[#allocation0 + $0x9] ss:$0 sm:$0xff] }
 0x52d   :  { %v408_v13 = vpop.xlane.xlu1 %407 }
 0x52e   :  { %v409_v14 = vsub.f32 %v1626_v46, %v408_v13 }
 0x530   :  { %v410_v15 = vmul.f32 %v1699_v21, %v409_v14 }
 0x532   :  { %v411_v16 = vsel %vm354_vm13, %v410_v15, 0.0  ;;  %vm688_vm13 = vcmask 97368  }
 0x533   :  { %v412_v17 = vadd.f32 %v411_v16, %v351_v36  ;;  %vm708_vm15 = vmand %vm688_vm13, %vm249_vm8 }
 0x535   :  { %v467_v19 = vmul.f32 %v417_v38, %v412_v17 }
 0x537   :  { %468 = vadd.xlane.f32.xlu0 %v467_v19 }
 0x53c   :  { %v483_v3 = vpop.xlane.xlu0 %482  ;;  %v504_v27 = vpop.xlane.xlu1 %503 }
 0x53d   :  { %v484_v23 = vsub.f32 %v480_v18, %v483_v3  ;;  %v505_v31 = vsub.f32 %v1581_v5, %v504_v27 }
 0x53f   :  { %1510 = vrsqrt.f32 %v484_v23 }
 0x540   :  { %v456_v24 = vpop.xlane.xlu0 %455 }
 0x541   :  { %v457_v25 = vsub.f32 %v1601_v22, %v456_v24 }
 0x543   :  { %v458_v26 = vmul.f32 %v1509_v59, %v457_v25 }
 0x545   :  { %v459_v29 = vsel %vm415_vm0, %v458_v26, 0.0 }
 0x546   :  { %v460_v30 = vadd.f32 %v459_v29, %v399_v10 }
 0x548   :  { %v515_v21 = vmul.f32 %v478_v9, %v460_v30 }
 0x549   :  { %v1733_v32 = vpop.eup %1510 }
 0x54a   :  { %v506_v33 = vmul.f32 %v1733_v32, %v505_v31  ;;  %516 = vadd.xlane.f32.xlu1 %v515_v21 }
 0x54c   :  { %v507_v34 = vsel %vm476_vm4, %v506_v33, 0.0 }
 0x54d   :  { %v508_v35 = vadd.f32 %v507_v34, %v447_v8 }
 0x54f   :  { %510 = vst [vmem:[#allocation1 + $0x8] sm:$0xff] %v508_v35 }
 0x556   :  { %v539_v37 = vld [vmem:[#allocation1 + $0x8] ss:$0 sm:$0xff] }
 0x557   :  { %v551_v38 = vmul.f32 %v539_v37, %v508_v35  ;;  %v542_v40 = vmul.f32 %v539_v37, %v539_v37 }
 0x559   :  { %552 = vadd.xlane.f32.xlu1 %v551_v38  ;;  %543 = vadd.xlane.f32.xlu0 %v542_v40 }
 0x5c4   :  { %v469_v28 = vpop.xlane.xlu0 %468 }
 0x5c5   :  { %v470_v41 = vsub.f32 %v1626_v46, %v469_v28  ;;  %v641_v28 = vld [vmem:[#allocation0 + $0xa] ss:$0 sm:$0xff] }
 0x5c7   :  { %v471_v42 = vmul.f32 %v1509_v59, %v470_v41 }
 0x5c9   :  { %v472_v20 = vsel %vm415_vm0, %v471_v42, 0.0  ;;  %vm739_vm0 = vcmask 105568  }
 0x5ca   :  { %v473_v43 = vadd.f32 %v472_v20, %v412_v17  ;;  %vm759_vm3 = vmand %vm739_vm0, %vm310_vm11 }
 0x5cc   :  { %v528_v44 = vmul.f32 %v478_v9, %v473_v43 }
 0x5ce   :  { %529 = vadd.xlane.f32.xlu0 %v528_v44 }
 0x5d7   :  { %v517_v45 = vpop.xlane.xlu1 %516 }
 0x5d8   :  { %v518_v47 = vsub.f32 %v1601_v22, %v517_v45 }
 0x5da   :  { %v519_v48 = vmul.f32 %v1733_v32, %v518_v47 }
 0x5dc   :  { %v520_v49 = vsel %vm476_vm4, %v519_v48, 0.0 }
 0x5dd   :  { %v521_v50 = vadd.f32 %v520_v49, %v460_v30 }
 0x5df   :  { %v564_v51 = vmul.f32 %v539_v37, %v521_v50 }
 0x5e1   :  { %565 = vadd.xlane.f32.xlu1 %v564_v51 }
 0x5e6   :  { %v544_v54 = vpop.xlane.xlu0 %543  ;;  %v553_v56 = vpop.xlane.xlu1 %552 }
 0x5e7   :  { %v545_v55 = vsub.f32 %v541_v39, %v544_v54  ;;  %v554_v36 = vsub.f32 %v1581_v5, %v553_v56 }
 0x5e9   :  { %1512 = vrsqrt.f32 %v545_v55 }
 0x5f3   :  { %v1513_v57 = vpop.eup %1512 }
 0x5f4   :  { %v555_v58 = vmul.f32 %v1513_v57, %v554_v36 }
 0x5f6   :  { %v556_v59 = vsel %vm537_vm6, %v555_v58, 0.0 }
 0x5f7   :  { %v557_v60 = vadd.f32 %v556_v59, %v508_v35 }
 0x5f9   :  { %559 = vst [vmem:[#allocation1 + $0x8] sm:$0xff] %v557_v60 }
 0x600   :  { %v588_v61 = vld [vmem:[#allocation1 + $0x9] ss:$0 sm:$0xff] }
 0x601   :  { %v600_v62 = vmul.f32 %v588_v61, %v557_v60  ;;  %v591_v63 = vmul.f32 %v588_v61, %v588_v61 }
 0x603   :  { %601 = vadd.xlane.f32.xlu1 %v600_v62  ;;  %592 = vadd.xlane.f32.xlu0 %v591_v63 }
 0x65b   :  { %v530_v53 = vpop.xlane.xlu0 %529 }
 0x65c   :  { %v531_v0 = vsub.f32 %v1626_v46, %v530_v53  ;;  %v692_v53 = vld [vmem:[#allocation0 + $0xb] ss:$0 sm:$0xff] }
 0x65e   :  { %v532_v1 = vmul.f32 %v1733_v32, %v531_v0 }
 0x660   :  { %v533_v2 = vsel %vm476_vm4, %v532_v1, 0.0 }
 0x661   :  { %v534_v4 = vadd.f32 %v533_v2, %v473_v43 }
 0x663   :  { %v577_v6 = vmul.f32 %v539_v37, %v534_v4 }
 0x665   :  { %578 = vadd.xlane.f32.xlu0 %v577_v6 }
 0x66e   :  { %v566_v7 = vpop.xlane.xlu1 %565 }
 0x66f   :  { %v567_v8 = vsub.f32 %v1601_v22, %v566_v7 }
 0x671   :  { %v568_v9 = vmul.f32 %v1513_v57, %v567_v8 }
 0x673   :  { %v569_v10 = vsel %vm537_vm6, %v568_v9, 0.0 }
 0x674   :  { %v570_v52 = vadd.f32 %v569_v10, %v521_v50 }
 0x676   :  { %v615_v11 = vmul.f32 %v588_v61, %v570_v52 }
 0x678   :  { %616 = vadd.xlane.f32.xlu1 %v615_v11 }
 0x690   :  { %v593_v13 = vpop.xlane.xlu0 %592  ;;  %v602_v15 = vpop.xlane.xlu1 %601 }
 0x691   :  { %v594_v14 = vsub.f32 %v590_v12, %v593_v13  ;;  %v603_v16 = vsub.f32 %v1581_v5, %v602_v15 }
 0x693   :  { %1514 = vrsqrt.f32 %v594_v14 }
 0x69d   :  { %v1515_v17 = vpop.eup %1514 }
 0x69e   :  { %v604_v19 = vmul.f32 %v1515_v17, %v603_v16 }
 0x6a0   :  { %v607_v18 = vsel %vm606_vm9, %v604_v19, 0.0  ;;  %vm841_vm9 = vcmask 121968  }
 0x6a1   :  { %v608_v3 = vadd.f32 %v607_v18, %v557_v60 }
 0x6a3   :  { %610 = vst [vmem:[#allocation1 + $0x8] sm:$0xff] %v608_v3 }
 0x6aa   :  { %v639_v23 = vld [vmem:[#allocation1 + $0xa] ss:$0 sm:$0xff] }
 0x6ab   :  { %v651_v24 = vmul.f32 %v639_v23, %v608_v3  ;;  %v642_v25 = vmul.f32 %v639_v23, %v639_v23 }
 0x6ad   :  { %652 = vadd.xlane.f32.xlu1 %v651_v24  ;;  %643 = vadd.xlane.f32.xlu0 %v642_v25  ;;  %v743_v25 = vld [vmem:[#allocation0 + $0xc] ss:$0 sm:$0xff] }
 0x6f2   :  { %v579_v26 = vpop.xlane.xlu0 %578 }
 0x6f3   :  { %v580_v27 = vsub.f32 %v1626_v46, %v579_v26 }
 0x6f5   :  { %v581_v29 = vmul.f32 %v1513_v57, %v580_v27 }
 0x6f7   :  { %v582_v30 = vsel %vm537_vm6, %v581_v29, 0.0  ;;  %v1770_v29 = vld [vmem:[#allocation0 + $0x8] sm:$0xff]  ;;  %vm790_vm6 = vcmask 113768  }
 0x6f8   :  { %v583_v31 = vadd.f32 %v582_v30, %v534_v4 }
 0x6fa   :  { %v628_v21 = vmul.f32 %v588_v61, %v583_v31 }
 0x6fc   :  { %629 = vadd.xlane.f32.xlu0 %v628_v21 }
 0x705   :  { %v617_v33 = vpop.xlane.xlu1 %616 }
 0x706   :  { %v618_v34 = vsub.f32 %v1601_v22, %v617_v33 }
 0x708   :  { %v619_v35 = vmul.f32 %v1515_v17, %v618_v34 }
 0x70a   :  { %v620_v37 = vsel %vm586_vm7, %v619_v35, 0.0 }
 0x70b   :  { %v621_v38 = vadd.f32 %v620_v37, %v570_v52 }
 0x70d   :  { %v666_v40 = vmul.f32 %v639_v23, %v621_v38 }
 0x70f   :  { %667 = vadd.xlane.f32.xlu1 %v666_v40 }
 0x73a   :  { %v644_v41 = vpop.xlane.xlu0 %643  ;;  %v653_v20 = vpop.xlane.xlu1 %652 }
 0x73b   :  { %v645_v42 = vsub.f32 %v641_v28, %v644_v41  ;;  %v654_v43 = vsub.f32 %v1581_v5, %v653_v20 }
 0x73d   :  { %1516 = vrsqrt.f32 %v645_v42 }
 0x747   :  { %v1517_v44 = vpop.eup %1516 }
 0x748   :  { %v655_v45 = vmul.f32 %v1517_v44, %v654_v43 }
 0x74a   :  { %v658_v47 = vsel %vm657_vm12, %v655_v45, 0.0  ;;  %vm892_vm12 = vcmask 130168  }
 0x74b   :  { %v659_v48 = vadd.f32 %v658_v47, %v608_v3 }
 0x74d   :  { %661 = vst [vmem:[#allocation1 + $0x8] sm:$0xff] %v659_v48 }
 0x754   :  { %v690_v49 = vld [vmem:[#allocation1 + $0xb] ss:$0 sm:$0xff] }
 0x755   :  { %v702_v50 = vmul.f32 %v690_v49, %v659_v48  ;;  %v693_v51 = vmul.f32 %v690_v49, %v690_v49 }
 0x757   :  { %703 = vadd.xlane.f32.xlu1 %v702_v50  ;;  %694 = vadd.xlane.f32.xlu0 %v693_v51 }
 0x789   :  { %v630_v39 = vpop.xlane.xlu0 %629 }
 0x78a   :  { %v631_v54 = vsub.f32 %v1626_v46, %v630_v39  ;;  %v794_v39 = vld [vmem:[#allocation0 + $0xd] ss:$0 sm:$0xff] }
 0x78c   :  { %v632_v55 = vmul.f32 %v1515_v17, %v631_v54 }
 0x78e   :  { %v633_v56 = vsel %vm586_vm7, %v632_v55, 0.0  ;;  %vm810_vm7 = vmand %vm790_vm6, %vm371_vm14 }
 0x78f   :  { %v634_v36 = vadd.f32 %v633_v56, %v583_v31 }
 0x791   :  { %v679_v57 = vmul.f32 %v639_v23, %v634_v36 }
 0x793   :  { %680 = vadd.xlane.f32.xlu0 %v679_v57 }
 0x79c   :  { %v668_v58 = vpop.xlane.xlu1 %667 }
 0x79d   :  { %v669_v59 = vsub.f32 %v1601_v22, %v668_v58 }
 0x79f   :  { %v670_v60 = vmul.f32 %v1517_v44, %v669_v59 }
 0x7a1   :  { %v671_v61 = vsel %vm637_vm10, %v670_v60, 0.0  ;;  %v1784_v60 = vld [vmem:[#allocation0 + $0x18] sm:$0xff] }
 0x7a2   :  { %v672_v62 = vadd.f32 %v671_v61, %v621_v38 }
 0x7a4   :  { %v717_v63 = vmul.f32 %v690_v49, %v672_v62 }
 0x7a6   :  { %718 = vadd.xlane.f32.xlu1 %v717_v63 }
 0x7e4   :  { %v695_v0 = vpop.xlane.xlu0 %694  ;;  %v704_v2 = vpop.xlane.xlu1 %703 }
 0x7e5   :  { %v696_v1 = vsub.f32 %v692_v53, %v695_v0  ;;  %v705_v4 = vsub.f32 %v1581_v5, %v704_v2 }
 0x7e7   :  { %1518 = vrsqrt.f32 %v696_v1 }
 0x7f1   :  { %v1519_v6 = vpop.eup %1518 }
 0x7f2   :  { %v706_v7 = vmul.f32 %v1519_v6, %v705_v4 }
 0x7f4   :  { %v709_v8 = vsel %vm708_vm15, %v706_v7, 0.0  ;;  %vm979_vm15 = vcmask 146568  }
 0x7f5   :  { %v710_v9 = vadd.f32 %v709_v8, %v659_v48 }
 0x7f7   :  { %712 = vst [vmem:[#allocation1 + $0x8] sm:$0xff] %v710_v9 }
 0x7fe   :  { %v741_v10 = vld [vmem:[#allocation1 + $0xc] ss:$0 sm:$0xff] }
 0x7ff   :  { %v753_v52 = vmul.f32 %v741_v10, %v710_v9  ;;  %v744_v11 = vmul.f32 %v741_v10, %v741_v10 }
 0x801   :  { %754 = vadd.xlane.f32.xlu1 %v753_v52  ;;  %745 = vadd.xlane.f32.xlu0 %v744_v11 }
 0x820   :  { %v681_v12 = vpop.xlane.xlu0 %680 }
 0x821   :  { %v682_v13 = vsub.f32 %v1626_v46, %v681_v12  ;;  %v845_v12 = vld [vmem:[#allocation0 + $0xe] ss:$0 sm:$0xff] }
 0x823   :  { %v683_v14 = vmul.f32 %v1517_v44, %v682_v13  ;;  %v1777_v44 = vld [vmem:[#allocation0 + $0x10] sm:$0xff] }
 0x825   :  { %v684_v15 = vsel %vm637_vm10, %v683_v14, 0.0  ;;  %vm861_vm10 = vmand %vm841_vm9, %vm432_vm1 }
 0x826   :  { %v685_v5 = vadd.f32 %v684_v15, %v634_v36 }
 0x828   :  { %v730_v16 = vmul.f32 %v690_v49, %v685_v5 }
 0x82a   :  { %731 = vadd.xlane.f32.xlu0 %v730_v16 }
 0x833   :  { %v719_v17 = vpop.xlane.xlu1 %718 }
 0x834   :  { %v720_v19 = vsub.f32 %v1601_v22, %v719_v17 }
 0x836   :  { %v721_v18 = vmul.f32 %v1519_v6, %v720_v19 }
 0x838   :  { %v722_v3 = vsel %vm688_vm13, %v721_v18, 0.0 }
 0x839   :  { %v723_v23 = vadd.f32 %v722_v3, %v672_v62 }
 0x83b   :  { %v768_v24 = vmul.f32 %v741_v10, %v723_v23 }
 0x83d   :  { %769 = vadd.xlane.f32.xlu1 %v768_v24 }
 0x88e   :  { %v746_v26 = vpop.xlane.xlu0 %745  ;;  %v755_v30 = vpop.xlane.xlu1 %754 }
 0x88f   :  { %v747_v27 = vsub.f32 %v743_v25, %v746_v26  ;;  %v756_v31 = vsub.f32 %v1770_v29, %v755_v30 }
 0x891   :  { %1520 = vrsqrt.f32 %v747_v27 }
 0x89b   :  { %v1521_v21 = vpop.eup %1520 }
 0x89c   :  { %v757_v22 = vmul.f32 %v1521_v21, %v756_v31 }
 0x89e   :  { %v760_v33 = vsel %vm759_vm3, %v757_v22, 0.0  ;;  %vm1017_vm3 = vcmask 154768  }
 0x89f   :  { %v761_v34 = vadd.f32 %v760_v33, %v710_v9 }
 0x8a1   :  { %763 = vst [vmem:[#allocation1 + $0x8] sm:$0xff] %v761_v34 }
 0x8a8   :  { %v792_v35 = vld [vmem:[#allocation1 + $0xd] ss:$0 sm:$0xff] }
 0x8a9   :  { %v804_v37 = vmul.f32 %v792_v35, %v761_v34  ;;  %v795_v38 = vmul.f32 %v792_v35, %v792_v35 }
 0x8ab   :  { %805 = vadd.xlane.f32.xlu1 %v804_v37  ;;  %796 = vadd.xlane.f32.xlu0 %v795_v38 }
 0x8b7   :  { %v732_v40 = vpop.xlane.xlu0 %731 }
 0x8b8   :  { %v733_v28 = vsub.f32 %v1626_v46, %v732_v40 }
 0x8ba   :  { %v734_v41 = vmul.f32 %v1519_v6, %v733_v28 }
 0x8bc   :  { %v735_v42 = vsel %vm688_vm13, %v734_v41, 0.0  ;;  %vm943_vm13 = vcmask 138368  }
 0x8bd   :  { %v736_v20 = vadd.f32 %v735_v42, %v685_v5 }
 0x8bf   :  { %v781_v43 = vmul.f32 %v741_v10, %v736_v20 }
 0x8c1   :  { %782 = vadd.xlane.f32.xlu0 %v781_v43 }
 0x8ca   :  { %v770_v45 = vpop.xlane.xlu1 %769 }
 0x8cb   :  { %v771_v47 = vsub.f32 %v1777_v44, %v770_v45 }
 0x8cd   :  { %v772_v48 = vmul.f32 %v1521_v21, %v771_v47 }
 0x8cf   :  { %v773_v49 = vsel %vm739_vm0, %v772_v48, 0.0 }
 0x8d0   :  { %v774_v50 = vadd.f32 %v773_v49, %v723_v23 }
 0x8d2   :  { %v819_v51 = vmul.f32 %v792_v35, %v774_v50 }
 0x8d4   :  { %820 = vadd.xlane.f32.xlu1 %v819_v51 }
 0x938   :  { %v797_v54 = vpop.xlane.xlu0 %796  ;;  %v806_v55 = vpop.xlane.xlu1 %805 }
 0x939   :  { %v798_v46 = vsub.f32 %v794_v39, %v797_v54  ;;  %v807_v56 = vsub.f32 %v1770_v29, %v806_v55 }
 0x93b   :  { %1522 = vrsqrt.f32 %v798_v46 }
 0x945   :  { %v1523_v36 = vpop.eup %1522 }
 0x946   :  { %v808_v57 = vmul.f32 %v1523_v36, %v807_v56 }
 0x948   :  { %v811_v58 = vsel %vm810_vm7, %v808_v57, 0.0  ;;  %vm1055_vm7 = vcmask 162968  }
 0x949   :  { %v812_v59 = vadd.f32 %v811_v58, %v761_v34 }
 0x94b   :  { %814 = vst [vmem:[#allocation1 + $0x8] sm:$0xff] %v812_v59 }
 0x94e   :  { %v783_v61 = vpop.xlane.xlu0 %782 }
 0x94f   :  { %v784_v62 = vsub.f32 %v1784_v60, %v783_v61 }
 0x951   :  { %v785_v63 = vmul.f32 %v1521_v21, %v784_v62  ;;  %v947_v62 = vld [vmem:[#allocation0 + $0x10] ss:$0 sm:$0xff] }
 0x952   :  { %v843_v53 = vld [vmem:[#allocation1 + $0xe] ss:$0 sm:$0xff] }
 0x953   :  { %v855_v0 = vmul.f32 %v843_v53, %v812_v59  ;;  %v846_v1 = vmul.f32 %v843_v53, %v843_v53  ;;  %v786_v2 = vsel %vm739_vm0, %v785_v63, 0.0  ;;  %vm999_vm0 = vmand %vm979_vm15, %vm127_vm2 }
 0x954   :  { %v787_v4 = vadd.f32 %v786_v2, %v736_v20  ;;  %v896_v20 = vld [vmem:[#allocation0 + $0xf] ss:$0 sm:$0xff] }
 0x955   :  { %856 = vadd.xlane.f32.xlu1 %v855_v0  ;;  %847 = vadd.xlane.f32.xlu0 %v846_v1 }
 0x956   :  { %v832_v6 = vmul.f32 %v792_v35, %v787_v4 }
 0x959   :  { %833 = vadd.xlane.f32.xlu0 %v832_v6 }
 0x961   :  { %v821_v7 = vpop.xlane.xlu1 %820 }
 0x962   :  { %v822_v8 = vsub.f32 %v1777_v44, %v821_v7 }
 0x964   :  { %v823_v9 = vmul.f32 %v1523_v36, %v822_v8 }
 0x966   :  { %v824_v10 = vsel %vm790_vm6, %v823_v9, 0.0 }
 0x967   :  { %v825_v52 = vadd.f32 %v824_v10, %v774_v50 }
 0x969   :  { %v870_v11 = vmul.f32 %v843_v53, %v825_v52 }
 0x96b   :  { %871 = vadd.xlane.f32.xlu1 %v870_v11 }
 0x9e2   :  { %v848_v13 = vpop.xlane.xlu0 %847  ;;  %v857_v17 = vpop.xlane.xlu1 %856 }
 0x9e3   :  { %v849_v14 = vsub.f32 %v845_v12, %v848_v13  ;;  %v858_v3 = vsub.f32 %v1770_v29, %v857_v17 }
 0x9e5   :  { %1524 = vrsqrt.f32 %v849_v14 }
 0x9e6   :  { %v834_v15 = vpop.xlane.xlu0 %833 }
 0x9e7   :  { %v835_v5 = vsub.f32 %v1784_v60, %v834_v15 }
 0x9e9   :  { %v836_v16 = vmul.f32 %v1523_v36, %v835_v5  ;;  %v983_v5 = vld [vmem:[#allocation0 + $0x11] ss:$0 sm:$0xff] }
 0x9eb   :  { %v837_v19 = vsel %vm790_vm6, %v836_v16, 0.0  ;;  %vm1037_vm6 = vmand %vm1017_vm3, %vm188_vm5 }
 0x9ec   :  { %v838_v18 = vadd.f32 %v837_v19, %v787_v4 }
 0x9ee   :  { %v883_v23 = vmul.f32 %v843_v53, %v838_v18 }
 0x9ef   :  { %v1525_v24 = vpop.eup %1524 }
 0x9f0   :  { %v859_v25 = vmul.f32 %v1525_v24, %v858_v3  ;;  %884 = vadd.xlane.f32.xlu1 %v883_v23 }
 0x9f2   :  { %v862_v26 = vsel %vm861_vm10, %v859_v25, 0.0  ;;  %vm1093_vm10 = vcmask 171168  }
 0x9f3   :  { %v1795_v27 = vadd.f32 %v862_v26, %v812_v59 }
 0x9f5   :  { %865 = vst [vmem:[#allocation1 + $0x8] sm:$0xff] %v1795_v27 }
 0x9f8   :  { %v872_v30 = vpop.xlane.xlu1 %871 }
 0x9f9   :  { %v873_v31 = vsub.f32 %v1777_v44, %v872_v30 }
 0x9fb   :  { %v874_v21 = vmul.f32 %v1525_v24, %v873_v31 }
 0x9fc   :  { %v1799_v22 = vld [vmem:[#allocation1 + $0xf] ss:$0 sm:$0xff] }
 0x9fd   :  { %v897_v29 = vmul.f32 %v1799_v22, %v1799_v22  ;;  %v875_v33 = vsel %vm841_vm9, %v874_v21, 0.0 }
 0x9fe   :  { %v876_v34 = vadd.f32 %v875_v33, %v825_v52 }
 0x9ff   :  { %898 = vadd.xlane.f32.xlu0 %v897_v29 }
 0xa00   :  { %v921_v35 = vmul.f32 %v1799_v22, %v876_v34 }
 0xa03   :  { %922 = vadd.xlane.f32.xlu0 %v921_v35 }
 0xa7d   :  { %v885_v37 = vpop.xlane.xlu1 %884 }
 0xa7e   :  { %v886_v38 = vsub.f32 %v1784_v60, %v885_v37 }
 0xa80   :  { %v887_v40 = vmul.f32 %v1525_v24, %v886_v38  ;;  %v1021_v38 = vld [vmem:[#allocation0 + $0x12] ss:$0 sm:$0xff] }
 0xa82   :  { %v888_v28 = vsel %vm841_vm9, %v887_v40, 0.0  ;;  %vm1075_vm9 = vmand %vm1055_vm7, %vm249_vm8 }
 0xa83   :  { %v889_v41 = vadd.f32 %v888_v28, %v838_v18 }
 0xa85   :  { %v934_v42 = vmul.f32 %v1799_v22, %v889_v41 }
 0xa87   :  { %935 = vadd.xlane.f32.xlu1 %v934_v42 }
 0xa8c   :  { %v899_v43 = vpop.xlane.xlu0 %898 }
 0xa8d   :  { %v900_v45 = vsub.f32 %v896_v20, %v899_v43 }
 0xa8f   :  { %1526 = vrsqrt.f32 %v900_v45 }
 0xa90   :  { %v923_v47 = vpop.xlane.xlu0 %922 }
 0xa91   :  { %v924_v48 = vsub.f32 %v1777_v44, %v923_v47 }
 0xa99   :  { %v1809_v49 = vpop.eup %1526 }
 0xa9a   :  { %v925_v50 = vmul.f32 %v1809_v49, %v924_v48 }
 0xa9c   :  { %v926_v51 = vsel %vm892_vm12, %v925_v50, 0.0 }
 0xa9d   :  { %v927_v39 = vadd.f32 %v926_v51, %v876_v34 }
 0xa9f   :  { %929 = vst [vmem:[#allocation1 + $0x10] sm:$0xff] %v927_v39 }
 0xaa6   :  { %v945_v54 = vld [vmem:[#allocation1 + $0x10] ss:$0 sm:$0xff] }
 0xaa7   :  { %v948_v46 = vmul.f32 %v945_v54, %v945_v54  ;;  %v957_v55 = vmul.f32 %v945_v54, %v927_v39 }
 0xaa9   :  { %949 = vadd.xlane.f32.xlu0 %v948_v46  ;;  %958 = vadd.xlane.f32.xlu1 %v957_v55 }
 0xb14   :  { %v936_v56 = vpop.xlane.xlu1 %935 }
 0xb15   :  { %v937_v36 = vsub.f32 %v1784_v60, %v936_v56 }
 0xb17   :  { %v938_v57 = vmul.f32 %v1809_v49, %v937_v36 }
 0xb19   :  { %v939_v58 = vsel %vm892_vm12, %v938_v57, 0.0  ;;  %v1059_v57 = vld [vmem:[#allocation0 + $0x13] ss:$0 sm:$0xff] }
 0xb1a   :  { %v940_v59 = vadd.f32 %v939_v58, %v889_v41 }
 0xb1c   :  { %v970_v61 = vmul.f32 %v945_v54, %v940_v59 }
 0xb1e   :  { %971 = vadd.xlane.f32.xlu0 %v970_v61 }
 0xb36   :  { %v950_v63 = vpop.xlane.xlu0 %949  ;;  %v959_v0 = vpop.xlane.xlu1 %958 }
 0xb37   :  { %v951_v53 = vsub.f32 %v947_v62, %v950_v63  ;;  %v960_v1 = vsub.f32 %v1777_v44, %v959_v0 }
 0xb39   :  { %1528 = vrsqrt.f32 %v951_v53 }
 0xb43   :  { %v1529_v2 = vpop.eup %1528 }
 0xb44   :  { %v961_v4 = vmul.f32 %v1529_v2, %v960_v1 }
 0xb46   :  { %v962_v6 = vsel %vm943_vm13, %v961_v4, 0.0 }
 0xb47   :  { %v963_v7 = vadd.f32 %v962_v6, %v927_v39 }
 0xb49   :  { %965 = vst [vmem:[#allocation1 + $0x10] sm:$0xff] %v963_v7 }
 0xb50   :  { %v981_v8 = vld [vmem:[#allocation1 + $0x11] ss:$0 sm:$0xff] }
 0xb51   :  { %v993_v9 = vmul.f32 %v981_v8, %v963_v7  ;;  %v984_v10 = vmul.f32 %v981_v8, %v981_v8 }
 0xb53   :  { %994 = vadd.xlane.f32.xlu0 %v993_v9  ;;  %985 = vadd.xlane.f32.xlu1 %v984_v10 }
 0xbab   :  { %v972_v52 = vpop.xlane.xlu0 %971 }
 0xbac   :  { %v973_v11 = vsub.f32 %v1784_v60, %v972_v52 }
 0xbae   :  { %v974_v12 = vmul.f32 %v1529_v2, %v973_v11 }
 0xbb0   :  { %v975_v13 = vsel %vm943_vm13, %v974_v12, 0.0  ;;  %v1097_v12 = vld [vmem:[#allocation0 + $0x14] ss:$0 sm:$0xff]  ;;  %vm1113_vm13 = vmand %vm1093_vm10, %vm310_vm11 }
 0xbb1   :  { %v976_v14 = vadd.f32 %v975_v13, %v940_v59 }
 0xbb3   :  { %v1008_v15 = vmul.f32 %v981_v8, %v976_v14 }
 0xbb5   :  { %1009 = vadd.xlane.f32.xlu1 %v1008_v15 }
 0xbe0   :  { %v986_v16 = vpop.xlane.xlu1 %985  ;;  %v995_v19 = vpop.xlane.xlu0 %994 }
 0xbe1   :  { %v987_v17 = vsub.f32 %v983_v5, %v986_v16  ;;  %v996_v18 = vsub.f32 %v1777_v44, %v995_v19 }
 0xbe3   :  { %1530 = vrsqrt.f32 %v987_v17 }
 0xbed   :  { %v1531_v3 = vpop.eup %1530 }
 0xbee   :  { %v997_v23 = vmul.f32 %v1531_v3, %v996_v18 }
 0xbf0   :  { %v1000_v24 = vsel %vm999_vm0, %v997_v23, 0.0 }
 0xbf1   :  { %v1001_v25 = vadd.f32 %v1000_v24, %v963_v7 }
 0xbf3   :  { %1003 = vst [vmem:[#allocation1 + $0x10] sm:$0xff] %v1001_v25 }
 0xbfa   :  { %v1019_v26 = vld [vmem:[#allocation1 + $0x12] ss:$0 sm:$0xff] }
 0xbfb   :  { %v1031_v30 = vmul.f32 %v1019_v26, %v1001_v25  ;;  %v1022_v31 = vmul.f32 %v1019_v26, %v1019_v26 }
 0xbfd   :  { %1032 = vadd.xlane.f32.xlu1 %v1031_v30  ;;  %1023 = vadd.xlane.f32.xlu0 %v1022_v31 }
 0xc42   :  { %v1010_v21 = vpop.xlane.xlu1 %1009 }
 0xc43   :  { %v1011_v29 = vsub.f32 %v1784_v60, %v1010_v21 }
 0xc45   :  { %v1012_v33 = vmul.f32 %v1531_v3, %v1011_v29 }
 0xc47   :  { %v1013_v34 = vsel %vm979_vm15, %v1012_v33, 0.0  ;;  %v1135_v33 = vld [vmem:[#allocation0 + $0x15] ss:$0 sm:$0xff]  ;;  %vm1131_vm15 = vcmask 179368  }
 0xc48   :  { %v1014_v35 = vadd.f32 %v1013_v34, %v976_v14  ;;  %vm1151_vm0 = vmand %vm1131_vm15, %vm371_vm14 }
 0xc4a   :  { %v1046_v37 = vmul.f32 %v1019_v26, %v1014_v35 }
 0xc4c   :  { %1047 = vadd.xlane.f32.xlu0 %v1046_v37 }
 0xc8a   :  { %v1024_v40 = vpop.xlane.xlu0 %1023  ;;  %v1033_v41 = vpop.xlane.xlu1 %1032 }
 0xc8b   :  { %v1025_v28 = vsub.f32 %v1021_v38, %v1024_v40  ;;  %v1034_v42 = vsub.f32 %v1777_v44, %v1033_v41 }
 0xc8d   :  { %1532 = vrsqrt.f32 %v1025_v28 }
 0xc97   :  { %v1533_v20 = vpop.eup %1532 }
 0xc98   :  { %v1035_v43 = vmul.f32 %v1533_v20, %v1034_v42 }
 0xc9a   :  { %v1038_v45 = vsel %vm1037_vm6, %v1035_v43, 0.0 }
 0xc9b   :  { %v1039_v47 = vadd.f32 %v1038_v45, %v1001_v25 }
 0xc9d   :  { %1041 = vst [vmem:[#allocation1 + $0x10] sm:$0xff] %v1039_v47 }
 0xca4   :  { %v1057_v48 = vld [vmem:[#allocation1 + $0x13] ss:$0 sm:$0xff] }
 0xca5   :  { %v1069_v50 = vmul.f32 %v1057_v48, %v1039_v47  ;;  %v1060_v51 = vmul.f32 %v1057_v48, %v1057_v48 }
 0xca7   :  { %1070 = vadd.xlane.f32.xlu0 %v1069_v50  ;;  %1061 = vadd.xlane.f32.xlu1 %v1060_v51 }
 0xcd9   :  { %v1048_v39 = vpop.xlane.xlu0 %1047 }
 0xcda   :  { %v1049_v54 = vsub.f32 %v1784_v60, %v1048_v39 }
 0xcdc   :  { %v1050_v46 = vmul.f32 %v1533_v20, %v1049_v54 }
 0xcde   :  { %v1051_v55 = vsel %vm1017_vm3, %v1050_v46, 0.0  ;;  %v1173_v46 = vld [vmem:[#allocation0 + $0x16] ss:$0 sm:$0xff]  ;;  %vm1169_vm3 = vcmask 187568  }
 0xcdf   :  { %v1052_v56 = vadd.f32 %v1051_v55, %v1014_v35  ;;  %vm1189_vm6 = vmand %vm1169_vm3, %vm432_vm1 }
 0xce1   :  { %v1084_v36 = vmul.f32 %v1057_v48, %v1052_v56 }
 0xce3   :  { %1085 = vadd.xlane.f32.xlu1 %v1084_v36 }
 0xd34   :  { %v1062_v58 = vpop.xlane.xlu1 %1061  ;;  %v1071_v61 = vpop.xlane.xlu0 %1070 }
 0xd35   :  { %v1063_v59 = vsub.f32 %v1059_v57, %v1062_v58  ;;  %v1072_v62 = vsub.f32 %v1777_v44, %v1071_v61 }
 0xd37   :  { %1534 = vrsqrt.f32 %v1063_v59 }
 0xd41   :  { %v1535_v63 = vpop.eup %1534 }
 0xd42   :  { %v1073_v53 = vmul.f32 %v1535_v63, %v1072_v62 }
 0xd44   :  { %v1076_v0 = vsel %vm1075_vm9, %v1073_v53, 0.0  ;;  %vm1245_vm9 = vcmask 203968  }
 0xd45   :  { %v1077_v1 = vadd.f32 %v1076_v0, %v1039_v47 }
 0xd47   :  { %1079 = vst [vmem:[#allocation1 + $0x10] sm:$0xff] %v1077_v1 }
 0xd4e   :  { %v1095_v2 = vld [vmem:[#allocation1 + $0x14] ss:$0 sm:$0xff] }
 0xd4f   :  { %v1107_v4 = vmul.f32 %v1095_v2, %v1077_v1  ;;  %v1098_v6 = vmul.f32 %v1095_v2, %v1095_v2 }
 0xd51   :  { %1108 = vadd.xlane.f32.xlu1 %v1107_v4  ;;  %1099 = vadd.xlane.f32.xlu0 %v1098_v6 }
 0xd70   :  { %v1086_v7 = vpop.xlane.xlu1 %1085 }
 0xd71   :  { %v1087_v8 = vsub.f32 %v1784_v60, %v1086_v7 }
 0xd73   :  { %v1088_v9 = vmul.f32 %v1535_v63, %v1087_v8  ;;  %v1211_v8 = vld [vmem:[#allocation0 + $0x17] ss:$0 sm:$0xff] }
 0xd75   :  { %v1089_v10 = vsel %vm1055_vm7, %v1088_v9, 0.0  ;;  %vm1207_vm7 = vcmask 195768  }
 0xd76   :  { %v1090_v52 = vadd.f32 %v1089_v10, %v1052_v56 }
 0xd78   :  { %v1122_v11 = vmul.f32 %v1095_v2, %v1090_v52 }
 0xd7a   :  { %1123 = vadd.xlane.f32.xlu0 %v1122_v11 }
 0xdde   :  { %v1100_v13 = vpop.xlane.xlu0 %1099  ;;  %v1109_v15 = vpop.xlane.xlu1 %1108 }
 0xddf   :  { %v1101_v14 = vsub.f32 %v1097_v12, %v1100_v13  ;;  %v1110_v5 = vsub.f32 %v1777_v44, %v1109_v15 }
 0xde1   :  { %1536 = vrsqrt.f32 %v1101_v14 }
 0xdeb   :  { %v1537_v16 = vpop.eup %1536 }
 0xdec   :  { %v1111_v17 = vmul.f32 %v1537_v16, %v1110_v5 }
 0xdee   :  { %v1114_v19 = vsel %vm1113_vm13, %v1111_v17, 0.0 }
 0xdef   :  { %v1115_v18 = vadd.f32 %v1114_v19, %v1077_v1  ;;  %v1249_v19 = vld [vmem:[#allocation0 + $0x18] ss:$0 sm:$0xff] }
 0xdf1   :  { %1117 = vst [vmem:[#allocation1 + $0x10] sm:$0xff] %v1115_v18 }
 0xdf8   :  { %v1133_v3 = vld [vmem:[#allocation1 + $0x15] ss:$0 sm:$0xff] }
 0xdf9   :  { %v1145_v23 = vmul.f32 %v1133_v3, %v1115_v18  ;;  %v1136_v24 = vmul.f32 %v1133_v3, %v1133_v3 }
 0xdfb   :  { %1146 = vadd.xlane.f32.xlu0 %v1145_v23  ;;  %1137 = vadd.xlane.f32.xlu1 %v1136_v24 }
 0xe07   :  { %v1124_v25 = vpop.xlane.xlu0 %1123 }
 0xe08   :  { %v1125_v26 = vsub.f32 %v1784_v60, %v1124_v25 }
 0xe0a   :  { %v1126_v30 = vmul.f32 %v1537_v16, %v1125_v26 }
 0xe0c   :  { %v1127_v31 = vsel %vm1093_vm10, %v1126_v30, 0.0  ;;  %vm1268_vm10 = vcmask 212168  }
 0xe0d   :  { %v1128_v21 = vadd.f32 %v1127_v31, %v1090_v52  ;;  %vm1288_vm13 = vmand %vm1268_vm10, %vm127_vm2  ;;  %vm1393_vm10 = vcmask 253168  }
 0xe0f   :  { %v1160_v29 = vmul.f32 %v1133_v3, %v1128_v21 }
 0xe11   :  { %1161 = vadd.xlane.f32.xlu1 %v1160_v29 }
 0xe88   :  { %v1138_v34 = vpop.xlane.xlu1 %1137  ;;  %v1147_v37 = vpop.xlane.xlu0 %1146 }
 0xe89   :  { %v1139_v35 = vsub.f32 %v1135_v33, %v1138_v34  ;;  %v1148_v38 = vsub.f32 %v1777_v44, %v1147_v37  ;;  %v1272_v34 = vld [vmem:[#allocation0 + $0x19] ss:$0 sm:$0xff] }
 0xe8b   :  { %1538 = vrsqrt.f32 %v1139_v35 }
 0xe95   :  { %v1539_v40 = vpop.eup %1538 }
 0xe96   :  { %v1149_v28 = vmul.f32 %v1539_v40, %v1148_v38 }
 0xe98   :  { %v1152_v41 = vsel %vm1151_vm0, %v1149_v28, 0.0  ;;  %vm1318_vm0 = vcmask 228568  }
 0xe99   :  { %v1153_v42 = vadd.f32 %v1152_v41, %v1115_v18 }
 0xe9b   :  { %1155 = vst [vmem:[#allocation1 + $0x10] sm:$0xff] %v1153_v42 }
 0xe9e   :  { %v1162_v20 = vpop.xlane.xlu1 %1161 }
 0xe9f   :  { %v1163_v43 = vsub.f32 %v1784_v60, %v1162_v20 }
 0xea1   :  { %v1164_v45 = vmul.f32 %v1539_v40, %v1163_v43 }
 0xea2   :  { %v1171_v47 = vld [vmem:[#allocation1 + $0x16] ss:$0 sm:$0xff] }
 0xea3   :  { %v1183_v48 = vmul.f32 %v1171_v47, %v1153_v42  ;;  %v1174_v50 = vmul.f32 %v1171_v47, %v1171_v47  ;;  %v1165_v51 = vsel %vm1131_vm15, %v1164_v45, 0.0  ;;  %vm1293_vm15 = vcmask 220368  }
 0xea4   :  { %v1166_v39 = vadd.f32 %v1165_v51, %v1128_v21  ;;  %vm1313_vm2 = vmand %vm1293_vm15, %vm188_vm5 }
 0xea5   :  { %1184 = vadd.xlane.f32.xlu1 %v1183_v48  ;;  %1175 = vadd.xlane.f32.xlu0 %v1174_v50  ;;  %v1297_v48 = vld [vmem:[#allocation0 + $0x1a] ss:$0 sm:$0xff]  ;;  %vm1338_vm5 = vmand %vm1318_vm0, %vm249_vm8 }
 0xea6   :  { %v1198_v54 = vmul.f32 %v1171_v47, %v1166_v39 }
 0xea9   :  { %1199 = vadd.xlane.f32.xlu0 %v1198_v54 }
 0xf32   :  { %v1176_v55 = vpop.xlane.xlu0 %1175  ;;  %v1185_v36 = vpop.xlane.xlu1 %1184 }
 0xf33   :  { %v1177_v56 = vsub.f32 %v1173_v46, %v1176_v55  ;;  %v1186_v57 = vsub.f32 %v1777_v44, %v1185_v36 }
 0xf35   :  { %1540 = vrsqrt.f32 %v1177_v56 }
 0xf36   :  { %v1200_v59 = vpop.xlane.xlu0 %1199 }
 0xf37   :  { %v1201_v63 = vsub.f32 %v1784_v60, %v1200_v59 }
 0xf3f   :  { %v1541_v58 = vpop.eup %1540 }
 0xf40   :  { %v1187_v61 = vmul.f32 %v1541_v58, %v1186_v57  ;;  %v1202_v0 = vmul.f32 %v1541_v58, %v1201_v63 }
 0xf42   :  { %v1190_v62 = vsel %vm1189_vm6, %v1187_v61, 0.0  ;;  %v1203_v1 = vsel %vm1169_vm3, %v1202_v0, 0.0  ;;  %v1322_v61 = vld [vmem:[#allocation0 + $0x1b] ss:$0 sm:$0xff]  ;;  %vm1343_vm3 = vcmask 236768   ;;  %vm1368_vm6 = vcmask 244968  }
 0xf43   :  { %v1844_v53 = vadd.f32 %v1190_v62, %v1153_v42  ;;  %v1204_v2 = vadd.f32 %v1203_v1, %v1166_v39  ;;  %vm1363_vm8 = vmand %vm1343_vm3, %vm310_vm11 }
 0xf44   :  { %vm1388_vm11 = vmand %vm1368_vm6, %vm371_vm14  ;;  %vm493_vm14 = vcmask 1047559  }
 0xf45   :  { %1193 = vst [vmem:[#allocation1 + $0x10] sm:$0xff] %v1844_v53 }
 0xf4c   :  { %v1847_v4 = vld [vmem:[#allocation1 + $0x17] ss:$0 sm:$0xff] }
 0xf4d   :  { %v1212_v6 = vmul.f32 %v1847_v4, %v1847_v4  ;;  %v1236_v7 = vmul.f32 %v1847_v4, %v1204_v2 }
 0xf4f   :  { %1213 = vadd.xlane.f32.xlu1 %v1212_v6  ;;  %1237 = vadd.xlane.f32.xlu0 %v1236_v7 }
 0xfdc   :  { %v1214_v9 = vpop.xlane.xlu1 %1213  ;;  %v1238_v52 = vpop.xlane.xlu0 %1237 }
 0xfdd   :  { %v1215_v10 = vsub.f32 %v1211_v8, %v1214_v9  ;;  %v1239_v11 = vsub.f32 %v1784_v60, %v1238_v52 }
 0xfdf   :  { %1542 = vrsqrt.f32 %v1215_v10 }
 0xfe9   :  { %v1853_v12 = vpop.eup %1542 }
 0xfea   :  { %v1240_v13 = vmul.f32 %v1853_v12, %v1239_v11  ;;  %v1347_v11 = vld [vmem:[#allocation0 + $0x1c] ss:$0 sm:$0xff] }
 0xfec   :  { %v1241_v14 = vsel %vm1207_vm7, %v1240_v13, 0.0 }
 0xfed   :  { %v1242_v15 = vadd.f32 %v1241_v14, %v1204_v2 }
 0xfef   :  { %1244 = vst [vmem:[#allocation1 + $0x18] sm:$0xff] %v1242_v15 }
 0xff6   :  { %v1247_v5 = vld [vmem:[#allocation1 + $0x18] ss:$0 sm:$0xff] }
 0xff7   :  { %v1259_v16 = vmul.f32 %v1247_v5, %v1242_v15  ;;  %v1250_v17 = vmul.f32 %v1247_v5, %v1247_v5 }
 0xff9   :  { %1260 = vadd.xlane.f32.xlu0 %v1259_v16  ;;  %1251 = vadd.xlane.f32.xlu1 %v1250_v17 }
0x1086   :  { %v1252_v18 = vpop.xlane.xlu1 %1251  ;;  %v1261_v23 = vpop.xlane.xlu0 %1260 }
0x1087   :  { %v1253_v3 = vsub.f32 %v1249_v19, %v1252_v18  ;;  %v1262_v24 = vsub.f32 %v1784_v60, %v1261_v23 }
0x1089   :  { %1544 = vrsqrt.f32 %v1253_v3 }
0x1093   :  { %v1545_v25 = vpop.eup %1544 }
0x1094   :  { %v1263_v26 = vmul.f32 %v1545_v25, %v1262_v24  ;;  %v1372_v25 = vld [vmem:[#allocation0 + $0x1d] ss:$0 sm:$0xff] }
0x1096   :  { %v1264_v30 = vsel %vm1245_vm9, %v1263_v26, 0.0  ;;  %vm494_vm9 = vmand %vm476_vm4, %vm493_vm14 }
0x1097   :  { %v1265_v31 = vadd.f32 %v1264_v30, %v1242_v15  ;;  %vm1413_vm4 = vmand %vm1393_vm10, %vm432_vm1 }
0x1098   :  { %vm912_vm1 = vmand %vm892_vm12, %vm493_vm14 }
0x1099   :  { %1267 = vst [vmem:[#allocation1 + $0x18] sm:$0xff] %v1265_v31 }
0x10a0   :  { %v1270_v21 = vld [vmem:[#allocation1 + $0x19] ss:$0 sm:$0xff] }
0x10a1   :  { %v1282_v29 = vmul.f32 %v1270_v21, %v1265_v31  ;;  %v1273_v33 = vmul.f32 %v1270_v21, %v1270_v21 }
0x10a3   :  { %1283 = vadd.xlane.f32.xlu0 %v1282_v29  ;;  %1274 = vadd.xlane.f32.xlu1 %v1273_v33 }
0x1130   :  { %v1275_v35 = vpop.xlane.xlu1 %1274  ;;  %v1284_v38 = vpop.xlane.xlu0 %1283 }
0x1131   :  { %v1276_v37 = vsub.f32 %v1272_v34, %v1275_v35  ;;  %v1285_v40 = vsub.f32 %v1784_v60, %v1284_v38 }
0x1133   :  { %1546 = vrsqrt.f32 %v1276_v37 }
0x113d   :  { %v1547_v28 = vpop.eup %1546 }
0x113e   :  { %v1286_v41 = vmul.f32 %v1547_v28, %v1285_v40  ;;  %v487_v28 = vld [vmem:[#allocation1] sm:$0xff] }
0x1140   :  { %v1289_v42 = vsel %vm1288_vm13, %v1286_v41, 0.0  ;;  %v1560_v41 = vld [vmem:[#allocation1 + $0x7] ss:$0 sm:$0xff]  ;;  %vm1227_vm13 = vmand %vm1207_vm7, %vm493_vm14  ;;  %vm1418_vm7 = vcmask 261368  }
0x1141   :  { %v1290_v20 = vadd.f32 %v1289_v42, %v1265_v31  ;;  %v488_v42 = vmul.f32 %v1560_v41, %v487_v28  ;;  %vm1438_vm15 = vmand %vm1418_vm7, %vm493_vm14 }
0x1143   :  { %1292 = vst [vmem:[#allocation1 + $0x18] sm:$0xff] %v1290_v20 }
0x114a   :  { %v1295_v43 = vld [vmem:[#allocation1 + $0x1a] ss:$0 sm:$0xff] }
0x114b   :  { %v1307_v45 = vmul.f32 %v1295_v43, %v1290_v20  ;;  %v1298_v47 = vmul.f32 %v1295_v43, %v1295_v43  ;;  %v1397_v43 = vld [vmem:[#allocation0 + $0x1e] ss:$0 sm:$0xff] }
0x114d   :  { %1308 = vadd.xlane.f32.xlu0 %v1307_v45  ;;  %1299 = vadd.xlane.f32.xlu1 %v1298_v47 }
0x11da   :  { %v1300_v50 = vpop.xlane.xlu1 %1299  ;;  %v1309_v39 = vpop.xlane.xlu0 %1308 }
0x11db   :  { %v1301_v51 = vsub.f32 %v1297_v48, %v1300_v50  ;;  %v1310_v54 = vsub.f32 %v1784_v60, %v1309_v39  ;;  %v486_v50 = vld [vmem:[#allocation0] sm:$0xff] }
0x11dd   :  { %1548 = vrsqrt.f32 %v1301_v51 }
0x11e7   :  { %v1549_v46 = vpop.eup %1548 }
0x11e8   :  { %v1311_v55 = vmul.f32 %v1549_v46, %v1310_v54 }
0x11ea   :  { %v1314_v56 = vsel %vm1313_vm2, %v1311_v55, 0.0 }
0x11eb   :  { %v1315_v36 = vadd.f32 %v1314_v56, %v1290_v20  ;;  %v1221_v20 = vmul.f32 %v1847_v4, %v1844_v53 }
0x11ed   :  { %1317 = vst [vmem:[#allocation1 + $0x18] sm:$0xff] %v1315_v36 }
0x11f4   :  { %v1320_v57 = vld [vmem:[#allocation1 + $0x1b] ss:$0 sm:$0xff] }
0x11f5   :  { %v1332_v58 = vmul.f32 %v1320_v57, %v1315_v36  ;;  %v1323_v59 = vmul.f32 %v1320_v57, %v1320_v57 }
0x11f7   :  { %1333 = vadd.xlane.f32.xlu0 %v1332_v58  ;;  %1324 = vadd.xlane.f32.xlu1 %v1323_v59 }
0x1284   :  { %v1325_v62 = vpop.xlane.xlu1 %1324  ;;  %v1334_v0 = vpop.xlane.xlu0 %1333 }
0x1285   :  { %v1326_v63 = vsub.f32 %v1322_v61, %v1325_v62  ;;  %v1335_v1 = vsub.f32 %v1784_v60, %v1334_v0  ;;  %v906_v0 = vmul.f32 %v1799_v22, %v1795_v27 }
0x1287   :  { %1550 = vrsqrt.f32 %v1326_v63 }
0x1291   :  { %v1551_v2 = vpop.eup %1550 }
0x1292   :  { %v1336_v6 = vmul.f32 %v1551_v2, %v1335_v1  ;;  %v1422_v2 = vld [vmem:[#allocation0 + $0x1f] ss:$0 sm:$0xff] }
0x1294   :  { %v1339_v7 = vsel %vm1338_vm5, %v1336_v6, 0.0 }
0x1295   :  { %v1340_v8 = vadd.f32 %v1339_v7, %v1315_v36  ;;  %v903_v7 = vld [vmem:[#allocation0 + $0x8] sm:$0xff] }
0x1297   :  { %1342 = vst [vmem:[#allocation1 + $0x18] sm:$0xff] %v1340_v8 }
0x129e   :  { %v1345_v9 = vld [vmem:[#allocation1 + $0x1c] ss:$0 sm:$0xff] }
0x129f   :  { %v1357_v10 = vmul.f32 %v1345_v9, %v1340_v8  ;;  %v1348_v52 = vmul.f32 %v1345_v9, %v1345_v9 }
0x12a1   :  { %1358 = vadd.xlane.f32.xlu0 %v1357_v10  ;;  %1349 = vadd.xlane.f32.xlu1 %v1348_v52 }
0x132e   :  { %v1350_v13 = vpop.xlane.xlu1 %1349  ;;  %v1359_v15 = vpop.xlane.xlu0 %1358 }
0x132f   :  { %v1351_v14 = vsub.f32 %v1347_v11, %v1350_v13  ;;  %v1360_v5 = vsub.f32 %v1784_v60, %v1359_v15 }
0x1331   :  { %1552 = vrsqrt.f32 %v1351_v14 }
0x133b   :  { %v1553_v16 = vpop.eup %1552 }
0x133c   :  { %v1361_v17 = vmul.f32 %v1553_v16, %v1360_v5 }
0x133e   :  { %v1364_v19 = vsel %vm1363_vm8, %v1361_v17, 0.0 }
0x133f   :  { %v1365_v18 = vadd.f32 %v1364_v19, %v1340_v8 }
0x1341   :  { %1367 = vst [vmem:[#allocation1 + $0x18] sm:$0xff] %v1365_v18 }
0x1348   :  { %v1370_v3 = vld [vmem:[#allocation1 + $0x1d] ss:$0 sm:$0xff] }
0x1349   :  { %v1382_v23 = vmul.f32 %v1370_v3, %v1365_v18  ;;  %v1373_v24 = vmul.f32 %v1370_v3, %v1370_v3 }
0x134b   :  { %1383 = vadd.xlane.f32.xlu0 %v1382_v23  ;;  %1374 = vadd.xlane.f32.xlu1 %v1373_v24 }
0x13d8   :  { %v1375_v26 = vpop.xlane.xlu1 %1374  ;;  %v1384_v31 = vpop.xlane.xlu0 %1383 }
0x13d9   :  { %v1376_v30 = vsub.f32 %v1372_v25, %v1375_v26  ;;  %v1385_v21 = vsub.f32 %v1784_v60, %v1384_v31 }
0x13db   :  { %1554 = vrsqrt.f32 %v1376_v30 }
0x13e5   :  { %v1555_v29 = vpop.eup %1554 }
0x13e6   :  { %v1386_v33 = vmul.f32 %v1555_v29, %v1385_v21 }
0x13e8   :  { %v1389_v34 = vsel %vm1388_vm11, %v1386_v33, 0.0 }
0x13e9   :  { %v1390_v35 = vadd.f32 %v1389_v34, %v1365_v18 }
0x13eb   :  { %1392 = vst [vmem:[#allocation1 + $0x18] sm:$0xff] %v1390_v35 }
0x13f2   :  { %v1395_v37 = vld [vmem:[#allocation1 + $0x1e] ss:$0 sm:$0xff] }
0x13f3   :  { %v1407_v38 = vmul.f32 %v1395_v37, %v1390_v35  ;;  %v1398_v40 = vmul.f32 %v1395_v37, %v1395_v37 }
0x13f5   :  { %1408 = vadd.xlane.f32.xlu0 %v1407_v38  ;;  %1399 = vadd.xlane.f32.xlu1 %v1398_v40 }
0x13f9   :  { %489 = vadd.xlane.f32.xlu0 %v488_v42 }
0x13fd   :  { %1222 = vadd.xlane.f32.xlu0 %v1221_v20 }
0x1482   :  { %v1409_v45 = vpop.xlane.xlu0 %1408  ;;  %v1400_v47 = vpop.xlane.xlu1 %1399 }
0x1483   :  { %v1401_v48 = vsub.f32 %v1397_v43, %v1400_v47  ;;  %v1410_v57 = vsub.f32 %v1784_v60, %v1409_v45 }
0x1485   :  { %1556 = vrsqrt.f32 %v1401_v48 }
0x1486   :  { %v490_v51 = vpop.xlane.xlu0 %489 }
0x1487   :  { %v491_v39 = vsub.f32 %v486_v50, %v490_v51 }
0x1489   :  { %v492_v54 = vmul.f32 %v1733_v32, %v491_v39 }
0x148a   :  { %v1223_v46 = vpop.xlane.xlu0 %1222 }
0x148b   :  { %v495_v55 = vsel %vm494_vm9, %v492_v54, 0.0  ;;  %v1224_v56 = vsub.f32 %v1777_v44, %v1223_v46 }
0x148c   :  { %v496_v4 = vadd.f32 %v495_v55, %v487_v28 }
0x148d   :  { %v1225_v36 = vmul.f32 %v1853_v12, %v1224_v56 }
0x148e   :  { %497 = vst [vmem:[#allocation1] sm:$0xff] %v496_v4  ;;  %1477 = vst [vmem:[%s1901_s1] sm:$0xff] %v496_v4 }
0x148f   :  { %v1557_v58 = vpop.eup %1556  ;;  %v1228_v32 = vsel %vm1227_vm13, %v1225_v36, 0.0 }
0x1490   :  { %v1411_v59 = vmul.f32 %v1557_v58, %v1410_v57  ;;  %v1229_v44 = vadd.f32 %v1228_v32, %v1844_v53 }
0x1492   :  { %v1414_v61 = vsel %vm1413_vm4, %v1411_v59, 0.0  ;;  %1231 = vst [vmem:[#allocation1 + $0x10] sm:$0xff] %v1229_v44  ;;  %1481 = vst [vmem:[%s1901_s1 + $0x10] sm:$0xff] %v1229_v44 }
0x1493   :  { %v1415_v12 = vadd.f32 %v1414_v61, %v1390_v35 }
0x1495   :  { %1417 = vst [vmem:[#allocation1 + $0x18] sm:$0xff] %v1415_v12 }
0x149c   :  { %v1420_v62 = vld [vmem:[#allocation1 + $0x1f] ss:$0 sm:$0xff] }
0x149d   :  { %v1423_v63 = vmul.f32 %v1420_v62, %v1420_v62  ;;  %v1432_v1 = vmul.f32 %v1420_v62, %v1415_v12 }
0x149f   :  { %1424 = vadd.xlane.f32.xlu1 %v1423_v63 }
0x14a3   :  { %907 = vadd.xlane.f32.xlu1 %v906_v0 }
0x14a7   :  { %1433 = vadd.xlane.f32.xlu1 %v1432_v1 }
0x152c   :  { %v1425_v6 = vpop.xlane.xlu1 %1424 }
0x152d   :  { %v1426_v53 = vsub.f32 %v1422_v2, %v1425_v6 }
0x152f   :  { %1558 = vrsqrt.f32 %v1426_v53 }
0x1530   :  { %v908_v8 = vpop.xlane.xlu1 %907 }
0x1531   :  { %v909_v9 = vsub.f32 %v903_v7, %v908_v8 }
0x1533   :  { %v910_v10 = vmul.f32 %v1809_v49, %v909_v9 }
0x1534   :  { %v1434_v11 = vpop.xlane.xlu1 %1433 }
0x1535   :  { %v913_v52 = vsel %vm912_vm1, %v910_v10, 0.0  ;;  %v1435_v22 = vsub.f32 %v1784_v60, %v1434_v11 }
0x1536   :  { %v914_v13 = vadd.f32 %v913_v52, %v1795_v27 }
0x1538   :  { %916 = vst [vmem:[#allocation1 + $0x8] sm:$0xff] %v914_v13  ;;  %1479 = vst [vmem:[%s1901_s1 + $0x8] sm:$0xff] %v914_v13 }
0x1539   :  { %v1559_v14 = vpop.eup %1558 }
0x153a   :  { %v1436_v15 = vmul.f32 %v1559_v14, %v1435_v22 }
0x153c   :  { %v1439_v5 = vsel %vm1438_vm15, %v1436_v15, 0.0 }
0x153d   :  { %v1440_v16 = vadd.f32 %v1439_v5, %v1415_v12 }
0x153f   :  { %1442 = vst [vmem:[#allocation1 + $0x18] sm:$0xff] %v1440_v16  ;;  %1483 = vst [vmem:[%s1901_s1 + $0x18] sm:$0xff] %v1440_v16 }

// kernel: asni_forward.3
= control target key start
LH: loop header
LB: loop body
LE: loop exit
PB: predicated region body
PF: predicated region fallthrough
CT: control target
= control target key end

     0   :  { %v15_v0 = vlaneseq  ;;  %s48_s0 = inlined_call_operand.vmem [shape: f32[1,512], index: 0, kind: input, shape index: {}]   ;;  %s49_s1 = inlined_call_operand.vmem [shape: f32[1,512], index: 1, kind: input, shape index: {}]   ;;  %s50_s2 = inlined_call_operand.vmem [shape: f32[1,512], index: 2, kind: output, shape index: {}]  }
   0x1   :  { %v11_v1 = vld [vmem:[%s48_s0] sm:$0xf] }
   0x2   :  { %v12_v2 = vld [vmem:[%s49_s1] sm:$0xf]  ;;  %vm17_vm0 = vcmp.lt.s32.totalorder %v15_v0, 512 }
   0x3   :  { %v13_v3 = vadd.f32 1.0, %v12_v2 }
   0x5   :  { %v14_v4 = vmul.f32 %v13_v3, %v11_v1 }
   0x7   :  { %19 = vst.msk [vmem:[%s50_s2] sm:$0xf] %vm17_vm0, %v14_v4 }

// kernel: asni_forward.2
= control target key start
LH: loop header
LB: loop body
LE: loop exit
PB: predicated region body
PF: predicated region fallthrough
CT: control target
= control target key end

     0   :  { %9 = vsyncpa [#allocation3], 0  ;;  %s281_s12 = smov [#allocation2]   ;;  %s377_s0 = inlined_call_operand.hbm [shape: f32[16,32], index: 0, kind: input, shape index: {}]   ;;  %s378_s1 = inlined_call_operand.vmem [shape: f32[1,32], index: 1, kind: input, shape index: {}]   ;;  %s379_s2 = inlined_call_operand.vmem [shape: f32[1,32,32], index: 2, kind: output, shape index: {0}]   ;;  %s380_s3 = inlined_call_operand.vmem [shape: f32[1,1,32], index: 3, kind: output, shape index: {1}]  }
   0x1   :  { %s21_s13 = sshll.u32 %s281_s12, 4  ;;  %s257_s16 = scalar_lea.hbm %s377_s0, 256  ;;  %s22_s13 = int_to_ptr.vmem [resolvable:$true] %s21_s13 }
   0x2   :  { %p258_p0 = scmp.ne.s32.totalorder %s377_s0, %s257_s16  ;;  %p261_p1 = scmp.lt.u32.totalorder %s257_s16, %s377_s0 }
   0x4   :  { %p263_p2 = pnand %p261_p1, %p258_p0 }
   0x6   :  { %266 = shalt.err (!%p263_p2)
}
   0x7   :  { %s267_s21 = scalar_lea.vmem %s22_s13, 256  ;;  %p272_p4 = scmp.lt.s32.totalorder %s22_s13, %s22_s13 }
   0x8   :  { %p268_p3 = scmp.ne.s32.totalorder %s22_s13, %s267_s21  ;;  %p273_p5 = scmp.lt.s32.totalorder %s267_s21, %s267_s21 }
   0xa   :  { %p274_p6 = por %p273_p5, %p272_p4 }
   0xc   :  { %p275_p7 = pnand %p274_p6, %p268_p3 }
   0xe   :  { %278 = shalt.err (!%p275_p7)
}
   0xf   :  { %s282_s22 = smov 128   ;;  %s283_s23 = smov 8  }
  0x10   :  { %27 = dma.hbm_to_vmem [thread:$0]  %s377_s0, 256, %s22_s13, [#allocation3], %s282_s22, %s282_s22, %s283_s23  }
  0x11   :  { %279 = dma.done.wait [#allocation3], 256  }
  0x12   :  { %280 = vsyncadd [#allocation3], 4294967040  ;;  %vm41_vm0 = vcmask 261120   ;;  %vm46_vm1 = vcmask 253952   ;;  %v284_v0 = vmov 0.0   ;;  %v48_v1 = vld [vmem:[#allocation2] sm:$0xff] }
  0x13   :  { %47 = vst.msk [vmem:[%s380_s3] sm:$0x1] %vm46_vm1, %v284_v0  ;;  %v226_v2 = vld [vmem:[%s378_s1] ss:$0 sm:$0xff]  ;;  %v49_v3 = vld [vmem:[#allocation2 + $0x8] sm:$0xff]  ;;  %vm109_vm2 = vcmask 130048  }
  0x14   :  { %42 = vst.msk [vmem:[%s379_s2] sm:$0xff] %vm41_vm0, %v284_v0  ;;  %43 = vst.msk [vmem:[%s379_s2 + $0x8] sm:$0xff] %vm41_vm0, %v284_v0  ;;  %v57_v4 = vsub.f32 %v48_v1, %v226_v2  ;;  %v58_v5 = vsub.f32 %v49_v3, %v226_v2 }
  0x15   :  { %44 = vst.msk [vmem:[%s379_s2 + $0x10] sm:$0xff] %vm41_vm0, %v284_v0  ;;  %45 = vst.msk [vmem:[%s379_s2 + $0x18] sm:$0xff] %vm41_vm0, %v284_v0 }
  0x16   :  { %77 = vxpose.xlu0.b32.start [1/2] (short) (narrow) %v57_v4, 32  ;;  %v61_v6 = vsel %vm41_vm0, %v57_v4, 0.0  ;;  %v62_v7 = vsel %vm41_vm0, %v58_v5, 0.0  ;;  %v247_v8 = vpack.c.bf16 %v58_v5, %v57_v4 }
  0x17   :  { %v63_v9 = vadd.f32 %v62_v7, %v61_v6 }
  0x18   :  { %248 = vmatprep.subr.bf16.mxu0 %v247_v8  ;;  %251 = vmatprep.subr.bf16.mxu1 %v247_v8 }
  0x19   :  { %v64_v10 = vrot.slane %v63_v9, 4  ;;  %250 = vmatpush3.bf16.msra.mxu0 %v247_v8  ;;  %252 = vmatpush3.bf16.msra.mxu1 %v247_v8 }
  0x1a   :  { %78 = vxpose.xlu0.b32.end [2/2] (short) (narrow) %v58_v5, 32  ;;  %v59_v15 = vld [vmem:[%s380_s3] sm:$0x1] }
  0x1b   :  { %v65_v11 = vadd.f32 %v64_v10, %v63_v9  ;;  %v74_v22 = vld [vmem:[%s379_s2 + $0x8] sm:$0xff]  ;;  %v73_v23 = vld [vmem:[%s379_s2] sm:$0xff] }
  0x1c   :  { %v76_v28 = vld [vmem:[%s379_s2 + $0x18] sm:$0xff]  ;;  %v75_v29 = vld [vmem:[%s379_s2 + $0x10] sm:$0xff] }
  0x1d   :  { %v66_v12 = vrot.slane %v65_v11, 2 }
  0x1f   :  { %v67_v13 = vadd.f32 %v66_v12, %v65_v11 }
  0x21   :  { %v68_v14 = vrot.slane %v67_v13, 1 }
  0x23   :  { %v69_v16 = vadd.f32 %v68_v14, %v67_v13 }
  0x25   :  { %v70_v17 = vadd.f32 %v69_v16, %v59_v15 }
  0x27   :  { %72 = vst.msk [vmem:[%s380_s3] sm:$0x1] %vm46_vm1, %v70_v17 }
  0x96   :  { %v93_v18 = vpop.trf.xlu0 }
  0x97   :  { %241 = vmatprep.mubr.msk.f32.mxu0 %vm109_vm2, %v93_v18 }
  0x9a   :  { %v94_v19 = vpop.trf.xlu0 }
  0x9b   :  { %242 = vmatmul.mubr.msk.f32.vlgmr.msra.gmra.mrb[0].mxu0 %vm109_vm2, %v94_v19 }
  0x9e   :  { %v95_v20 = vpop.trf.xlu0 }
  0x9f   :  { %244 = vmatprep.mubr.msk.f32.mxu1 %vm109_vm2, %v95_v20 }
  0xa2   :  { %v96_v21 = vpop.trf.xlu0 }
  0xa3   :  { %245 = vmatmul.mubr.msk.f32.vlgmr.msra.gmra.mrb[0].mxu1 %vm109_vm2, %v96_v21 }
 0x16e   :  { %v243_v24 = vpop.f32.mrb[0].mxu0 }
 0x16f   :  { %v208_v25 = vadd.f32 %v243_v24, %v74_v22  ;;  %v188_v26 = vpop.f32.mrb[1].mxu0 }
 0x170   :  { %v207_v27 = vadd.f32 %v188_v26, %v73_v23 }
 0x171   :  { %212 = vst.msk [vmem:[%s379_s2 + $0x8] sm:$0xff] %vm41_vm0, %v208_v25 }
 0x172   :  { %211 = vst.msk [vmem:[%s379_s2] sm:$0xff] %vm41_vm0, %v207_v27 }
 0x176   :  { %v246_v30 = vpop.f32.mrb[0].mxu1 }
 0x177   :  { %v210_v31 = vadd.f32 %v246_v30, %v76_v28  ;;  %v198_v32 = vpop.f32.mrb[1].mxu1 }
 0x178   :  { %v209_v33 = vadd.f32 %v198_v32, %v75_v29 }
 0x179   :  { %214 = vst.msk [vmem:[%s379_s2 + $0x18] sm:$0xff] %vm41_vm0, %v210_v31 }
 0x17a   :  { %213 = vst.msk [vmem:[%s379_s2 + $0x10] sm:$0xff] %vm41_vm0, %v209_v33 }
 0x17b   :  { %223 = vsyncpa [#allocation3], 1 }

</bundles_post_ra>
